<compile_context>
chip_gen: v7x
topology: tpu7x:2x2x1
jax: 0.10.0
libtpu: 0.0.40
codegen_flags: <defaults>
</compile_context>

<pallas_src>
import math

import jax
import jax.numpy as jnp
from jax.experimental import pallas as pl
from jax.experimental.pallas import tpu as pltpu  # noqa: F401 (TPU backend)

D_MODEL = 32
HEADS = 4
D_K = D_MODEL // HEADS
D_FF = 2048            # FeedForward default d_ff in the reference implementation
EPS = 1e-6             # Norm eps
NEG_INF = -1e9


# ----------------------------- kernel helpers -------------------------------

def _layernorm(x, alpha, bias):
    # Matches `Norm`: alpha * (x - mean) / (std + eps) + bias, where torch's
    # .std() is the unbiased (N-1) estimator.  Reciprocal goes to the EUP.
    mean = jnp.mean(x, axis=-1, keepdims=True)
    var = jnp.sum((x - mean) ** 2, axis=-1, keepdims=True) / (D_MODEL - 1)
    inv = pl.reciprocal(jnp.sqrt(var) + EPS, approx=True)
    return alpha[None, :] * (x - mean) * inv + bias[None, :]


def _attention(q2d, k2d, v2d, bias, wo, bo):
    # q2d: (Nq, D) bf16; k2d/v2d: (Nkv, D) bf16 (already cast once after the
    # projection); bias: (Nq, Nkv) f32 block-diagonal additive mask bias with
    # Nq = B*Lq, Nkv = B*Lkv (cross-batch entries are -1e9, so one batched
    # softmax over the flattened key axis reproduces per-batch attention).
    # The 1/sqrt(d_k) scale is already folded into the Q projection weights.
    qh = jnp.stack([q2d[:, h * D_K:(h + 1) * D_K] for h in range(HEADS)], axis=0)  # (H,Nq,dk)
    kh = jnp.stack([k2d[:, h * D_K:(h + 1) * D_K] for h in range(HEADS)], axis=0)  # (H,Nkv,dk)
    vh = jnp.stack([v2d[:, h * D_K:(h + 1) * D_K] for h in range(HEADS)], axis=0)  # (H,Nkv,dk)

    # one batched dot_general over all heads; mask bias broadcasts over heads
    s = jnp.einsum('hqd,hkd->hqk', qh, kh,
                   preferred_element_type=jnp.float32) + bias[None, :, :]
    s = s - jnp.max(s, axis=-1, keepdims=True)               # stable softmax (f32)
    p = jnp.exp(s)
    p = p * pl.reciprocal(jnp.sum(p, axis=-1, keepdims=True), approx=True)
    # attention-prob dropout: inference-mode identity
    o = jnp.einsum('hqk,hkd->hqd', p.astype(jnp.bfloat16), vh,
                   preferred_element_type=jnp.float32)       # (H, Nq, dk) f32

    # re-assemble heads with a single lane concat -> (Nq, D), then project
    concat = jnp.concatenate([o[h] for h in range(HEADS)], axis=-1)
    return jnp.dot(concat.astype(jnp.bfloat16), wo,
                   preferred_element_type=jnp.float32) + bo


# --------------------------------- kernel -----------------------------------

def decoder_layer_kernel(x_ref, e_ref, trg_bias_ref, src_bias_ref,
                         ln_a_ref, ln_b_ref,
                         w_qkv_self_ref, b_qkv_self_ref, wo_self_ref, bo_self_ref,
                         wq_cross_ref, bq_cross_ref, w_kv_cross_ref, b_kv_cross_ref,
                         wo_cross_ref, bo_cross_ref,
                         ff_w1_ref, ff_b1_ref, ff_w2_ref, ff_b2_ref,
                         out_ref):
    D = D_MODEL
    bf16 = jnp.bfloat16
    x = x_ref[...]                      # (B*Lt, D) f32
    e = e_ref[...]                      # (B*Ls, D) bf16 (pre-cast wrapper-side)
    ln_a = ln_a_ref[...]                # (3, D)
    ln_b = ln_b_ref[...]                # (3, D)

    # ---- self-attention block (fused QKV projection, bf16 cast once) ----
    x2 = _layernorm(x, ln_a[0], ln_b[0])
    qkv = (jnp.dot(x2.astype(bf16), w_qkv_self_ref[...],
                   preferred_element_type=jnp.float32)
           + b_qkv_self_ref[...]).astype(bf16)               # (B*Lt, 3D) bf16
    x = x + _attention(qkv[:, :D], qkv[:, D:2 * D], qkv[:, 2 * D:],
                       trg_bias_ref[...], wo_self_ref[...], bo_self_ref[...])
    # dropout_1: identity

    # ---- cross-attention block (K/V from encoder outputs, fused KV) ----
    x2 = _layernorm(x, ln_a[1], ln_b[1])
    q = (jnp.dot(x2.astype(bf16), wq_cross_ref[...],
                 preferred_element_type=jnp.float32)
         + bq_cross_ref[...]).astype(bf16)                   # (B*Lt, D) bf16
    kv = (jnp.dot(e, w_kv_cross_ref[...],
                  preferred_element_type=jnp.float32)
          + b_kv_cross_ref[...]).astype(bf16)                # (B*Ls, 2D) bf16
    x = x + _attention(q, kv[:, :D], kv[:, D:], src_bias_ref[...],
                       wo_cross_ref[...], bo_cross_ref[...])
    # dropout_2: identity

    # ---- feed-forward block ----
    x2 = _layernorm(x, ln_a[2], ln_b[2])
    h = jnp.maximum(jnp.dot(x2.astype(bf16), ff_w1_ref[...],
                            preferred_element_type=jnp.float32)
                    + ff_b1_ref[...], 0.0)                   # ReLU; FF dropout: identity
    ff = jnp.dot(h.astype(bf16), ff_w2_ref[...],
                 preferred_element_type=jnp.float32) + ff_b2_ref[...]
    out_ref[...] = x + ff                                    # dropout_3: identity


# -------------------------------- wrapper ------------------------------------

def _block_diag_bias(mask, lq):
    """mask: (B, mq, Lkv) with mq in {1, lq}.  Returns a (B*lq, B*Lkv) f32
    additive bias: within-batch blocks carry the mask bias (0 / -1e9),
    cross-batch blocks are -1e9, so one batched softmax over the flattened
    (b, k) key axis reproduces per-batch masked attention exactly."""
    B, _, lkv = mask.shape
    bias = jnp.where(mask == 0.0, NEG_INF, 0.0).astype(jnp.float32)   # (B, mq, lkv)
    bias = jnp.broadcast_to(bias, (B, lq, lkv))
    same = jnp.arange(B)[:, None, None, None] == jnp.arange(B)[None, None, :, None]
    full = jnp.where(same, bias[:, :, None, :], NEG_INF)              # (B, lq, B, lkv)
    return full.reshape(B * lq, B * lkv)


def decoder_layer(x, e_outputs, src_mask, trg_mask, params):
    B, Lt, D = x.shape
    Ls = e_outputs.shape[1]
    ln_a, ln_b, attn_w, attn_b, ff_w1, ff_b1, ff_w2, ff_b2 = params
    scale = 1.0 / math.sqrt(D_K)
    bf16 = jnp.bfloat16

    # --- parameter prep (wrapper side, once): fuse QKV, fold scale, cast bf16 ---
    w_qkv_self = jnp.concatenate(
        [attn_w[0, 0] * scale, attn_w[0, 1], attn_w[0, 2]], axis=1).astype(bf16)   # (D, 3D)
    b_qkv_self = jnp.concatenate(
        [attn_b[0, 0] * scale, attn_b[0, 1], attn_b[0, 2]], axis=0)[None, :]       # (1, 3D)
    wo_self = attn_w[0, 3].astype(bf16)
    bo_self = attn_b[0, 3][None, :]

    wq_cross = (attn_w[1, 0] * scale).astype(bf16)                                 # (D, D)
    bq_cross = (attn_b[1, 0] * scale)[None, :]
    w_kv_cross = jnp.concatenate([attn_w[1, 1], attn_w[1, 2]], axis=1).astype(bf16)  # (D, 2D)
    b_kv_cross = jnp.concatenate([attn_b[1, 1], attn_b[1, 2]], axis=0)[None, :]
    wo_cross = attn_w[1, 3].astype(bf16)
    bo_cross = attn_b[1, 3][None, :]

    # --- mask -> additive bias precomputed wrapper-side (no in-kernel where) ---
    trg_bias = _block_diag_bias(trg_mask, Lt)   # (B*Lt, B*Lt)
    src_bias = _block_diag_bias(src_mask, Lt)   # (B*Lt, B*Ls)

    # Grid fully collapsed: a single invocation with everything VMEM-resident
    # (total footprint well under 1 MiB at these sizes).
    out2d = pl.pallas_call(
        decoder_layer_kernel,
        out_shape=jax.ShapeDtypeStruct((B * Lt, D), jnp.float32),
    )(x.reshape(B * Lt, D), e_outputs.reshape(B * Ls, D).astype(bf16),
      trg_bias, src_bias,
      ln_a, ln_b,
      w_qkv_self, b_qkv_self, wo_self, bo_self,
      wq_cross, bq_cross, w_kv_cross, b_kv_cross, wo_cross, bo_cross,
      ff_w1.astype(bf16), ff_b1, ff_w2.astype(bf16), ff_b2)
    return out2d.reshape(B, Lt, D)


# --------------------------- pure-JAX reference ------------------------------

def reference(x, e, src_mask, trg_mask, params):
    ln_a, ln_b, attn_w, attn_b, ff_w1, ff_b1, ff_w2, ff_b2 = params

    def norm(x, a, b):
        mean = x.mean(-1, keepdims=True)
        var = ((x - mean) ** 2).sum(-1, keepdims=True) / (D_MODEL - 1)
        return a * (x - mean) / (jnp.sqrt(var) + EPS) + b

    def mha(q_in, kv_in, w, b, mask):
        B, Lq, _ = q_in.shape
        Lkv = kv_in.shape[1]
        q = (q_in @ w[0] + b[0]).reshape(B, Lq, HEADS, D_K).transpose(0, 2, 1, 3)
        k = (kv_in @ w[1] + b[1]).reshape(B, Lkv, HEADS, D_K).transpose(0, 2, 1, 3)
        v = (kv_in @ w[2] + b[2]).reshape(B, Lkv, HEADS, D_K).transpose(0, 2, 1, 3)
        s = jnp.einsum('bhqd,bhkd->bhqk', q, k) / math.sqrt(D_K)
        s = jnp.where(mask[:, None] == 0.0, NEG_INF, s)
        p = jax.nn.softmax(s, axis=-1)
        o = jnp.einsum('bhqk,bhkd->bhqd', p, v).transpose(0, 2, 1, 3).reshape(B, Lq, D_MODEL)
        return o @ w[3] + b[3]

    x2 = norm(x, ln_a[0], ln_b[0])
    x = x + mha(x2, x2, attn_w[0], attn_b[0], trg_mask)
    x2 = norm(x, ln_a[1], ln_b[1])
    x = x + mha(x2, e, attn_w[1], attn_b[1], src_mask)
    x2 = norm(x, ln_a[2], ln_b[2])
    h = jax.nn.relu(x2 @ ff_w1 + ff_b1)
    return x + (h @ ff_w2 + ff_b2)


# ----------------------------------- main ------------------------------------

if __name__ == "__main__":
    B, Lt, Ls = 2, 8, 8
    key = jax.random.PRNGKey(0)
    k_x, k_e, k_w, k_b, k_w1, k_b1, k_w2, k_b2 = jax.random.split(key, 8)

    x = jax.random.normal(k_x, (B, Lt, D_MODEL), jnp.float32)
    e_outputs = jax.random.normal(k_e, (B, Ls, D_MODEL), jnp.float32)

    # causal target mask (B, Lt, Lt); source padding mask (B, 1, Ls)
    trg_mask = jnp.broadcast_to(
        jnp.tril(jnp.ones((Lt, Lt), jnp.float32)), (B, Lt, Lt))
    src_mask = jnp.ones((B, 1, Ls), jnp.float32)
    src_mask = src_mask.at[1, 0, Ls - 2:].set(0.0)   # pad out last 2 src tokens of batch 1

    # deterministic synthetic parameters (weights stored (in, out); y = x @ W + b)
    ln_a = jnp.ones((3, D_MODEL), jnp.float32)       # Norm.alpha init
    ln_b = jnp.zeros((3, D_MODEL), jnp.float32)      # Norm.bias init
    attn_w = jax.random.normal(k_w, (2, 4, D_MODEL, D_MODEL), jnp.float32) / math.sqrt(D_MODEL)
    attn_b = jax.random.normal(k_b, (2, 4, D_MODEL), jnp.float32) * 0.02
    ff_w1 = jax.random.normal(k_w1, (D_MODEL, D_FF), jnp.float32) / math.sqrt(D_MODEL)
    ff_b1 = jax.random.normal(k_b1, (1, D_FF), jnp.float32) * 0.02
    ff_w2 = jax.random.normal(k_w2, (D_FF, D_MODEL), jnp.float32) / math.sqrt(D_FF)
    ff_b2 = jax.random.normal(k_b2, (1, D_MODEL), jnp.float32) * 0.02
    params = (ln_a, ln_b, attn_w, attn_b, ff_w1, ff_b1, ff_w2, ff_b2)

    out = decoder_layer(x, e_outputs, src_mask, trg_mask, params)
    out = jax.block_until_ready(out)

    ref = reference(x, e_outputs, src_mask, trg_mask, params)
    assert out.shape == (B, Lt, D_MODEL)
    assert bool(jnp.all(jnp.isfinite(out)))
    # bf16 MXU operands + approx reciprocals vs f32 reference -> ~0.5% relative error
    assert jnp.allclose(out, ref, atol=2e-2, rtol=2e-2), \
        f"max abs diff {float(jnp.max(jnp.abs(out - ref)))}"
    print("KERNEL_OK")
</pallas_src>

<mosaic_0001>
module attributes {stable_mosaic.version = 11 : i64} {
  func.func @decoder_layer_kernel(%arg0: memref<16x32xf32, #tpu.memory_space<vmem>>, %arg1: memref<16x32xbf16, #tpu.memory_space<vmem>>, %arg2: memref<16x16xf32, #tpu.memory_space<vmem>>, %arg3: memref<16x16xf32, #tpu.memory_space<vmem>>, %arg4: memref<3x32xf32, #tpu.memory_space<vmem>>, %arg5: memref<3x32xf32, #tpu.memory_space<vmem>>, %arg6: memref<32x96xbf16, #tpu.memory_space<vmem>>, %arg7: memref<1x96xf32, #tpu.memory_space<vmem>>, %arg8: memref<32x32xbf16, #tpu.memory_space<vmem>>, %arg9: memref<1x32xf32, #tpu.memory_space<vmem>>, %arg10: memref<32x32xbf16, #tpu.memory_space<vmem>>, %arg11: memref<1x32xf32, #tpu.memory_space<vmem>>, %arg12: memref<32x64xbf16, #tpu.memory_space<vmem>>, %arg13: memref<1x64xf32, #tpu.memory_space<vmem>>, %arg14: memref<32x32xbf16, #tpu.memory_space<vmem>>, %arg15: memref<1x32xf32, #tpu.memory_space<vmem>>, %arg16: memref<32x2048xbf16, #tpu.memory_space<vmem>>, %arg17: memref<1x2048xf32, #tpu.memory_space<vmem>>, %arg18: memref<2048x32xbf16, #tpu.memory_space<vmem>>, %arg19: memref<1x32xf32, #tpu.memory_space<vmem>>, %arg20: memref<16x32xf32, #tpu.memory_space<vmem>>) attributes {dimension_semantics = [], scalar_prefetch = 0 : i64, scratch_operands = 0 : i64, tpu.core_type = #tpu.core_type<tc>} {
    %c0 = arith.constant 0 : index
    %c0_0 = arith.constant 0 : index
    %0 = vector.load %arg0[%c0, %c0_0] : memref<16x32xf32, #tpu.memory_space<vmem>>, vector<16x32xf32>
    %c0_1 = arith.constant 0 : index
    %c0_2 = arith.constant 0 : index
    %1 = vector.load %arg1[%c0_1, %c0_2] : memref<16x32xbf16, #tpu.memory_space<vmem>>, vector<16x32xbf16>
    %c0_3 = arith.constant 0 : index
    %c0_4 = arith.constant 0 : index
    %2 = vector.load %arg4[%c0_3, %c0_4] : memref<3x32xf32, #tpu.memory_space<vmem>>, vector<3x32xf32>
    %c0_5 = arith.constant 0 : index
    %c0_6 = arith.constant 0 : index
    %3 = vector.load %arg5[%c0_5, %c0_6] : memref<3x32xf32, #tpu.memory_space<vmem>>, vector<3x32xf32>
    %4 = vector.extract_strided_slice %2 {offsets = [0, 0], sizes = [1, 32], strides = [1, 1]} : vector<3x32xf32> to vector<1x32xf32>
    %5 = vector.shape_cast %4 : vector<1x32xf32> to vector<32xf32>
    %6 = vector.extract_strided_slice %3 {offsets = [0, 0], sizes = [1, 32], strides = [1, 1]} : vector<3x32xf32> to vector<1x32xf32>
    %7 = vector.shape_cast %6 : vector<1x32xf32> to vector<32xf32>
    %cst = arith.constant dense<0.000000e+00> : vector<16xf32>
    %8 = vector.multi_reduction <add>, %0, %cst [1] : vector<16x32xf32> to vector<16xf32>
    %9 = vector.shape_cast %8 : vector<16xf32> to vector<16x1xf32>
    %cst_7 = arith.constant 3.200000e+01 : f32
    %10 = vector.broadcast %cst_7 : f32 to vector<16x1xf32>
    %11 = arith.divf %9, %10 : vector<16x1xf32>
    %12 = vector.broadcast %11 : vector<16x1xf32> to vector<16x32xf32>
    %13 = arith.subf %0, %12 : vector<16x32xf32>
    %14 = arith.mulf %13, %13 : vector<16x32xf32>
    %cst_8 = arith.constant dense<0.000000e+00> : vector<16xf32>
    %15 = vector.multi_reduction <add>, %14, %cst_8 [1] : vector<16x32xf32> to vector<16xf32>
    %16 = vector.shape_cast %15 : vector<16xf32> to vector<16x1xf32>
    %cst_9 = arith.constant 3.100000e+01 : f32
    %17 = vector.broadcast %cst_9 : f32 to vector<16x1xf32>
    %18 = arith.divf %16, %17 : vector<16x1xf32>
    %19 = math.sqrt %18 : vector<16x1xf32>
    %cst_10 = arith.constant 9.99999997E-7 : f32
    %20 = vector.broadcast %cst_10 : f32 to vector<16x1xf32>
    %21 = arith.addf %19, %20 : vector<16x1xf32>
    %22 = tpu.reciprocal %21 {approx = true} : vector<16x1xf32> -> vector<16x1xf32>
    %23 = vector.shape_cast %5 : vector<32xf32> to vector<1x32xf32>
    %24 = vector.broadcast %11 : vector<16x1xf32> to vector<16x32xf32>
    %25 = arith.subf %0, %24 : vector<16x32xf32>
    %26 = vector.broadcast %23 : vector<1x32xf32> to vector<16x32xf32>
    %27 = arith.mulf %26, %25 : vector<16x32xf32>
    %28 = vector.broadcast %22 : vector<16x1xf32> to vector<16x32xf32>
    %29 = arith.mulf %27, %28 : vector<16x32xf32>
    %30 = vector.shape_cast %7 : vector<32xf32> to vector<1x32xf32>
    %31 = vector.broadcast %30 : vector<1x32xf32> to vector<16x32xf32>
    %32 = arith.addf %29, %31 : vector<16x32xf32>
    %33 = arith.truncf %32 : vector<16x32xf32> to vector<16x32xbf16>
    %c0_11 = arith.constant 0 : index
    %c0_12 = arith.constant 0 : index
    %34 = vector.load %arg6[%c0_11, %c0_12] : memref<32x96xbf16, #tpu.memory_space<vmem>>, vector<32x96xbf16>
    %cst_13 = arith.constant dense<0.000000e+00> : vector<16x96xf32>
    %35 = tpu.matmul %33, %34, %cst_13 {dimension_numbers = #tpu.dot_dimension_numbers<[1], [0], [0], [1], [0, 0, 1, 1], [], []>} : vector<16x32xbf16>, vector<32x96xbf16>, vector<16x96xf32> -> vector<16x96xf32>
    %c0_14 = arith.constant 0 : index
    %c0_15 = arith.constant 0 : index
    %36 = vector.load %arg7[%c0_14, %c0_15] : memref<1x96xf32, #tpu.memory_space<vmem>>, vector<1x96xf32>
    %37 = vector.broadcast %36 : vector<1x96xf32> to vector<16x96xf32>
    %38 = arith.addf %35, %37 : vector<16x96xf32>
    %39 = arith.truncf %38 : vector<16x96xf32> to vector<16x96xbf16>
    %40 = vector.extract_strided_slice %39 {offsets = [0, 0], sizes = [16, 32], strides = [1, 1]} : vector<16x96xbf16> to vector<16x32xbf16>
    %41 = vector.extract_strided_slice %39 {offsets = [0, 32], sizes = [16, 32], strides = [1, 1]} : vector<16x96xbf16> to vector<16x32xbf16>
    %42 = vector.extract_strided_slice %39 {offsets = [0, 64], sizes = [16, 32], strides = [1, 1]} : vector<16x96xbf16> to vector<16x32xbf16>
    %c0_16 = arith.constant 0 : index
    %c0_17 = arith.constant 0 : index
    %43 = vector.load %arg2[%c0_16, %c0_17] : memref<16x16xf32, #tpu.memory_space<vmem>>, vector<16x16xf32>
    %c0_18 = arith.constant 0 : index
    %c0_19 = arith.constant 0 : index
    %44 = vector.load %arg8[%c0_18, %c0_19] : memref<32x32xbf16, #tpu.memory_space<vmem>>, vector<32x32xbf16>
    %c0_20 = arith.constant 0 : index
    %c0_21 = arith.constant 0 : index
    %45 = vector.load %arg9[%c0_20, %c0_21] : memref<1x32xf32, #tpu.memory_space<vmem>>, vector<1x32xf32>
    %46 = vector.extract_strided_slice %40 {offsets = [0, 0], sizes = [16, 8], strides = [1, 1]} : vector<16x32xbf16> to vector<16x8xbf16>
    %47 = vector.extract_strided_slice %40 {offsets = [0, 8], sizes = [16, 8], strides = [1, 1]} : vector<16x32xbf16> to vector<16x8xbf16>
    %48 = vector.extract_strided_slice %40 {offsets = [0, 16], sizes = [16, 8], strides = [1, 1]} : vector<16x32xbf16> to vector<16x8xbf16>
    %49 = vector.extract_strided_slice %40 {offsets = [0, 24], sizes = [16, 8], strides = [1, 1]} : vector<16x32xbf16> to vector<16x8xbf16>
    %50 = vector.shape_cast %46 : vector<16x8xbf16> to vector<1x16x8xbf16>
    %51 = vector.shape_cast %47 : vector<16x8xbf16> to vector<1x16x8xbf16>
    %52 = vector.shape_cast %48 : vector<16x8xbf16> to vector<1x16x8xbf16>
    %53 = vector.shape_cast %49 : vector<16x8xbf16> to vector<1x16x8xbf16>
    %54 = tpu.concatenate %50, %51, %52, %53 in 0 : vector<1x16x8xbf16>, vector<1x16x8xbf16>, vector<1x16x8xbf16>, vector<1x16x8xbf16> -> vector<4x16x8xbf16>
    %55 = vector.extract_strided_slice %41 {offsets = [0, 0], sizes = [16, 8], strides = [1, 1]} : vector<16x32xbf16> to vector<16x8xbf16>
    %56 = vector.extract_strided_slice %41 {offsets = [0, 8], sizes = [16, 8], strides = [1, 1]} : vector<16x32xbf16> to vector<16x8xbf16>
    %57 = vector.extract_strided_slice %41 {offsets = [0, 16], sizes = [16, 8], strides = [1, 1]} : vector<16x32xbf16> to vector<16x8xbf16>
    %58 = vector.extract_strided_slice %41 {offsets = [0, 24], sizes = [16, 8], strides = [1, 1]} : vector<16x32xbf16> to vector<16x8xbf16>
    %59 = vector.shape_cast %55 : vector<16x8xbf16> to vector<1x16x8xbf16>
    %60 = vector.shape_cast %56 : vector<16x8xbf16> to vector<1x16x8xbf16>
    %61 = vector.shape_cast %57 : vector<16x8xbf16> to vector<1x16x8xbf16>
    %62 = vector.shape_cast %58 : vector<16x8xbf16> to vector<1x16x8xbf16>
    %63 = tpu.concatenate %59, %60, %61, %62 in 0 : vector<1x16x8xbf16>, vector<1x16x8xbf16>, vector<1x16x8xbf16>, vector<1x16x8xbf16> -> vector<4x16x8xbf16>
    %64 = vector.extract_strided_slice %42 {offsets = [0, 0], sizes = [16, 8], strides = [1, 1]} : vector<16x32xbf16> to vector<16x8xbf16>
    %65 = vector.extract_strided_slice %42 {offsets = [0, 8], sizes = [16, 8], strides = [1, 1]} : vector<16x32xbf16> to vector<16x8xbf16>
    %66 = vector.extract_strided_slice %42 {offsets = [0, 16], sizes = [16, 8], strides = [1, 1]} : vector<16x32xbf16> to vector<16x8xbf16>
    %67 = vector.extract_strided_slice %42 {offsets = [0, 24], sizes = [16, 8], strides = [1, 1]} : vector<16x32xbf16> to vector<16x8xbf16>
    %68 = vector.shape_cast %64 : vector<16x8xbf16> to vector<1x16x8xbf16>
    %69 = vector.shape_cast %65 : vector<16x8xbf16> to vector<1x16x8xbf16>
    %70 = vector.shape_cast %66 : vector<16x8xbf16> to vector<1x16x8xbf16>
    %71 = vector.shape_cast %67 : vector<16x8xbf16> to vector<1x16x8xbf16>
    %72 = tpu.concatenate %68, %69, %70, %71 in 0 : vector<1x16x8xbf16>, vector<1x16x8xbf16>, vector<1x16x8xbf16>, vector<1x16x8xbf16> -> vector<4x16x8xbf16>
    "tpu.trace_start"() <{level = 10 : i32, message = "hqd,hkd->hqk"}> : () -> ()
    %cst_22 = arith.constant dense<0.000000e+00> : vector<4x16x16xf32>
    %73 = tpu.matmul %54, %63, %cst_22 {dimension_numbers = #tpu.dot_dimension_numbers<[2], [2], [1], [1], [0, 0, 0, 1, 1, 1], [0], [0]>} : vector<4x16x8xbf16>, vector<4x16x8xbf16>, vector<4x16x16xf32> -> vector<4x16x16xf32>
    "tpu.trace_stop"() : () -> ()
    %74 = vector.shape_cast %43 : vector<16x16xf32> to vector<1x16x16xf32>
    %75 = vector.broadcast %74 : vector<1x16x16xf32> to vector<4x16x16xf32>
    %76 = arith.addf %73, %75 : vector<4x16x16xf32>
    %cst_23 = arith.constant dense<0xFF800000> : vector<4x16xf32>
    %77 = vector.multi_reduction <maximumf>, %76, %cst_23 [2] : vector<4x16x16xf32> to vector<4x16xf32>
    %78 = vector.shape_cast %77 : vector<4x16xf32> to vector<4x16x1xf32>
    %79 = vector.broadcast %78 : vector<4x16x1xf32> to vector<4x16x16xf32>
    %80 = arith.subf %76, %79 : vector<4x16x16xf32>
    %81 = math.exp %80 : vector<4x16x16xf32>
    %cst_24 = arith.constant dense<0.000000e+00> : vector<4x16xf32>
    %82 = vector.multi_reduction <add>, %81, %cst_24 [2] : vector<4x16x16xf32> to vector<4x16xf32>
    %83 = vector.shape_cast %82 : vector<4x16xf32> to vector<4x16x1xf32>
    %84 = tpu.reciprocal %83 {approx = true} : vector<4x16x1xf32> -> vector<4x16x1xf32>
    %85 = vector.broadcast %84 : vector<4x16x1xf32> to vector<4x16x16xf32>
    %86 = arith.mulf %81, %85 : vector<4x16x16xf32>
    %87 = arith.truncf %86 : vector<4x16x16xf32> to vector<4x16x16xbf16>
    "tpu.trace_start"() <{level = 10 : i32, message = "hqk,hkd->hqd"}> : () -> ()
    %cst_25 = arith.constant dense<0.000000e+00> : vector<4x16x8xf32>
    %88 = tpu.matmul %87, %72, %cst_25 {dimension_numbers = #tpu.dot_dimension_numbers<[2], [1], [1], [2], [0, 0, 0, 1, 1, 2], [0], [0]>} : vector<4x16x16xbf16>, vector<4x16x8xbf16>, vector<4x16x8xf32> -> vector<4x16x8xf32>
    "tpu.trace_stop"() : () -> ()
    %89 = vector.extract_strided_slice %88 {offsets = [0, 0, 0], sizes = [1, 16, 8], strides = [1, 1, 1]} : vector<4x16x8xf32> to vector<1x16x8xf32>
    %90 = vector.shape_cast %89 : vector<1x16x8xf32> to vector<16x8xf32>
    %91 = vector.extract_strided_slice %88 {offsets = [1, 0, 0], sizes = [1, 16, 8], strides = [1, 1, 1]} : vector<4x16x8xf32> to vector<1x16x8xf32>
    %92 = vector.shape_cast %91 : vector<1x16x8xf32> to vector<16x8xf32>
    %93 = vector.extract_strided_slice %88 {offsets = [2, 0, 0], sizes = [1, 16, 8], strides = [1, 1, 1]} : vector<4x16x8xf32> to vector<1x16x8xf32>
    %94 = vector.shape_cast %93 : vector<1x16x8xf32> to vector<16x8xf32>
    %95 = vector.extract_strided_slice %88 {offsets = [3, 0, 0], sizes = [1, 16, 8], strides = [1, 1, 1]} : vector<4x16x8xf32> to vector<1x16x8xf32>
    %96 = vector.shape_cast %95 : vector<1x16x8xf32> to vector<16x8xf32>
    %97 = tpu.concatenate %90, %92, %94, %96 in 1 : vector<16x8xf32>, vector<16x8xf32>, vector<16x8xf32>, vector<16x8xf32> -> vector<16x32xf32>
    %98 = arith.truncf %97 : vector<16x32xf32> to vector<16x32xbf16>
    %cst_26 = arith.constant dense<0.000000e+00> : vector<16x32xf32>
    %99 = tpu.matmul %98, %44, %cst_26 {dimension_numbers = #tpu.dot_dimension_numbers<[1], [0], [0], [1], [0, 0, 1, 1], [], []>} : vector<16x32xbf16>, vector<32x32xbf16>, vector<16x32xf32> -> vector<16x32xf32>
    %100 = vector.broadcast %45 : vector<1x32xf32> to vector<16x32xf32>
    %101 = arith.addf %99, %100 : vector<16x32xf32>
    %102 = arith.addf %0, %101 : vector<16x32xf32>
    %103 = vector.extract_strided_slice %2 {offsets = [1, 0], sizes = [1, 32], strides = [1, 1]} : vector<3x32xf32> to vector<1x32xf32>
    %104 = vector.shape_cast %103 : vector<1x32xf32> to vector<32xf32>
    %105 = vector.extract_strided_slice %3 {offsets = [1, 0], sizes = [1, 32], strides = [1, 1]} : vector<3x32xf32> to vector<1x32xf32>
    %106 = vector.shape_cast %105 : vector<1x32xf32> to vector<32xf32>
    %cst_27 = arith.constant dense<0.000000e+00> : vector<16xf32>
    %107 = vector.multi_reduction <add>, %102, %cst_27 [1] : vector<16x32xf32> to vector<16xf32>
    %108 = vector.shape_cast %107 : vector<16xf32> to vector<16x1xf32>
    %cst_28 = arith.constant 3.200000e+01 : f32
    %109 = vector.broadcast %cst_28 : f32 to vector<16x1xf32>
    %110 = arith.divf %108, %109 : vector<16x1xf32>
    %111 = vector.broadcast %110 : vector<16x1xf32> to vector<16x32xf32>
    %112 = arith.subf %102, %111 : vector<16x32xf32>
    %113 = arith.mulf %112, %112 : vector<16x32xf32>
    %cst_29 = arith.constant dense<0.000000e+00> : vector<16xf32>
    %114 = vector.multi_reduction <add>, %113, %cst_29 [1] : vector<16x32xf32> to vector<16xf32>
    %115 = vector.shape_cast %114 : vector<16xf32> to vector<16x1xf32>
    %cst_30 = arith.constant 3.100000e+01 : f32
    %116 = vector.broadcast %cst_30 : f32 to vector<16x1xf32>
    %117 = arith.divf %115, %116 : vector<16x1xf32>
    %118 = math.sqrt %117 : vector<16x1xf32>
    %cst_31 = arith.constant 9.99999997E-7 : f32
    %119 = vector.broadcast %cst_31 : f32 to vector<16x1xf32>
    %120 = arith.addf %118, %119 : vector<16x1xf32>
    %121 = tpu.reciprocal %120 {approx = true} : vector<16x1xf32> -> vector<16x1xf32>
    %122 = vector.shape_cast %104 : vector<32xf32> to vector<1x32xf32>
    %123 = vector.broadcast %110 : vector<16x1xf32> to vector<16x32xf32>
    %124 = arith.subf %102, %123 : vector<16x32xf32>
    %125 = vector.broadcast %122 : vector<1x32xf32> to vector<16x32xf32>
    %126 = arith.mulf %125, %124 : vector<16x32xf32>
    %127 = vector.broadcast %121 : vector<16x1xf32> to vector<16x32xf32>
    %128 = arith.mulf %126, %127 : vector<16x32xf32>
    %129 = vector.shape_cast %106 : vector<32xf32> to vector<1x32xf32>
    %130 = vector.broadcast %129 : vector<1x32xf32> to vector<16x32xf32>
    %131 = arith.addf %128, %130 : vector<16x32xf32>
    %132 = arith.truncf %131 : vector<16x32xf32> to vector<16x32xbf16>
    %c0_32 = arith.constant 0 : index
    %c0_33 = arith.constant 0 : index
    %133 = vector.load %arg10[%c0_32, %c0_33] : memref<32x32xbf16, #tpu.memory_space<vmem>>, vector<32x32xbf16>
    %cst_34 = arith.constant dense<0.000000e+00> : vector<16x32xf32>
    %134 = tpu.matmul %132, %133, %cst_34 {dimension_numbers = #tpu.dot_dimension_numbers<[1], [0], [0], [1], [0, 0, 1, 1], [], []>} : vector<16x32xbf16>, vector<32x32xbf16>, vector<16x32xf32> -> vector<16x32xf32>
    %c0_35 = arith.constant 0 : index
    %c0_36 = arith.constant 0 : index
    %135 = vector.load %arg11[%c0_35, %c0_36] : memref<1x32xf32, #tpu.memory_space<vmem>>, vector<1x32xf32>
    %136 = vector.broadcast %135 : vector<1x32xf32> to vector<16x32xf32>
    %137 = arith.addf %134, %136 : vector<16x32xf32>
    %138 = arith.truncf %137 : vector<16x32xf32> to vector<16x32xbf16>
    %c0_37 = arith.constant 0 : index
    %c0_38 = arith.constant 0 : index
    %139 = vector.load %arg12[%c0_37, %c0_38] : memref<32x64xbf16, #tpu.memory_space<vmem>>, vector<32x64xbf16>
    %cst_39 = arith.constant dense<0.000000e+00> : vector<16x64xf32>
    %140 = tpu.matmul %1, %139, %cst_39 {dimension_numbers = #tpu.dot_dimension_numbers<[1], [0], [0], [1], [0, 0, 1, 1], [], []>} : vector<16x32xbf16>, vector<32x64xbf16>, vector<16x64xf32> -> vector<16x64xf32>
    %c0_40 = arith.constant 0 : index
    %c0_41 = arith.constant 0 : index
    %141 = vector.load %arg13[%c0_40, %c0_41] : memref<1x64xf32, #tpu.memory_space<vmem>>, vector<1x64xf32>
    %142 = vector.broadcast %141 : vector<1x64xf32> to vector<16x64xf32>
    %143 = arith.addf %140, %142 : vector<16x64xf32>
    %144 = arith.truncf %143 : vector<16x64xf32> to vector<16x64xbf16>
    %145 = vector.extract_strided_slice %144 {offsets = [0, 0], sizes = [16, 32], strides = [1, 1]} : vector<16x64xbf16> to vector<16x32xbf16>
    %146 = vector.extract_strided_slice %144 {offsets = [0, 32], sizes = [16, 32], strides = [1, 1]} : vector<16x64xbf16> to vector<16x32xbf16>
    %c0_42 = arith.constant 0 : index
    %c0_43 = arith.constant 0 : index
    %147 = vector.load %arg3[%c0_42, %c0_43] : memref<16x16xf32, #tpu.memory_space<vmem>>, vector<16x16xf32>
    %c0_44 = arith.constant 0 : index
    %c0_45 = arith.constant 0 : index
    %148 = vector.load %arg14[%c0_44, %c0_45] : memref<32x32xbf16, #tpu.memory_space<vmem>>, vector<32x32xbf16>
    %c0_46 = arith.constant 0 : index
    %c0_47 = arith.constant 0 : index
    %149 = vector.load %arg15[%c0_46, %c0_47] : memref<1x32xf32, #tpu.memory_space<vmem>>, vector<1x32xf32>
    %150 = vector.extract_strided_slice %138 {offsets = [0, 0], sizes = [16, 8], strides = [1, 1]} : vector<16x32xbf16> to vector<16x8xbf16>
    %151 = vector.extract_strided_slice %138 {offsets = [0, 8], sizes = [16, 8], strides = [1, 1]} : vector<16x32xbf16> to vector<16x8xbf16>
    %152 = vector.extract_strided_slice %138 {offsets = [0, 16], sizes = [16, 8], strides = [1, 1]} : vector<16x32xbf16> to vector<16x8xbf16>
    %153 = vector.extract_strided_slice %138 {offsets = [0, 24], sizes = [16, 8], strides = [1, 1]} : vector<16x32xbf16> to vector<16x8xbf16>
    %154 = vector.shape_cast %150 : vector<16x8xbf16> to vector<1x16x8xbf16>
    %155 = vector.shape_cast %151 : vector<16x8xbf16> to vector<1x16x8xbf16>
    %156 = vector.shape_cast %152 : vector<16x8xbf16> to vector<1x16x8xbf16>
    %157 = vector.shape_cast %153 : vector<16x8xbf16> to vector<1x16x8xbf16>
    %158 = tpu.concatenate %154, %155, %156, %157 in 0 : vector<1x16x8xbf16>, vector<1x16x8xbf16>, vector<1x16x8xbf16>, vector<1x16x8xbf16> -> vector<4x16x8xbf16>
    %159 = vector.extract_strided_slice %145 {offsets = [0, 0], sizes = [16, 8], strides = [1, 1]} : vector<16x32xbf16> to vector<16x8xbf16>
    %160 = vector.extract_strided_slice %145 {offsets = [0, 8], sizes = [16, 8], strides = [1, 1]} : vector<16x32xbf16> to vector<16x8xbf16>
    %161 = vector.extract_strided_slice %145 {offsets = [0, 16], sizes = [16, 8], strides = [1, 1]} : vector<16x32xbf16> to vector<16x8xbf16>
    %162 = vector.extract_strided_slice %145 {offsets = [0, 24], sizes = [16, 8], strides = [1, 1]} : vector<16x32xbf16> to vector<16x8xbf16>
    %163 = vector.shape_cast %159 : vector<16x8xbf16> to vector<1x16x8xbf16>
    %164 = vector.shape_cast %160 : vector<16x8xbf16> to vector<1x16x8xbf16>
    %165 = vector.shape_cast %161 : vector<16x8xbf16> to vector<1x16x8xbf16>
    %166 = vector.shape_cast %162 : vector<16x8xbf16> to vector<1x16x8xbf16>
    %167 = tpu.concatenate %163, %164, %165, %166 in 0 : vector<1x16x8xbf16>, vector<1x16x8xbf16>, vector<1x16x8xbf16>, vector<1x16x8xbf16> -> vector<4x16x8xbf16>
    %168 = vector.extract_strided_slice %146 {offsets = [0, 0], sizes = [16, 8], strides = [1, 1]} : vector<16x32xbf16> to vector<16x8xbf16>
    %169 = vector.extract_strided_slice %146 {offsets = [0, 8], sizes = [16, 8], strides = [1, 1]} : vector<16x32xbf16> to vector<16x8xbf16>
    %170 = vector.extract_strided_slice %146 {offsets = [0, 16], sizes = [16, 8], strides = [1, 1]} : vector<16x32xbf16> to vector<16x8xbf16>
    %171 = vector.extract_strided_slice %146 {offsets = [0, 24], sizes = [16, 8], strides = [1, 1]} : vector<16x32xbf16> to vector<16x8xbf16>
    %172 = vector.shape_cast %168 : vector<16x8xbf16> to vector<1x16x8xbf16>
    %173 = vector.shape_cast %169 : vector<16x8xbf16> to vector<1x16x8xbf16>
    %174 = vector.shape_cast %170 : vector<16x8xbf16> to vector<1x16x8xbf16>
    %175 = vector.shape_cast %171 : vector<16x8xbf16> to vector<1x16x8xbf16>
    %176 = tpu.concatenate %172, %173, %174, %175 in 0 : vector<1x16x8xbf16>, vector<1x16x8xbf16>, vector<1x16x8xbf16>, vector<1x16x8xbf16> -> vector<4x16x8xbf16>
    "tpu.trace_start"() <{level = 10 : i32, message = "hqd,hkd->hqk"}> : () -> ()
    %cst_48 = arith.constant dense<0.000000e+00> : vector<4x16x16xf32>
    %177 = tpu.matmul %158, %167, %cst_48 {dimension_numbers = #tpu.dot_dimension_numbers<[2], [2], [1], [1], [0, 0, 0, 1, 1, 1], [0], [0]>} : vector<4x16x8xbf16>, vector<4x16x8xbf16>, vector<4x16x16xf32> -> vector<4x16x16xf32>
    "tpu.trace_stop"() : () -> ()
    %178 = vector.shape_cast %147 : vector<16x16xf32> to vector<1x16x16xf32>
    %179 = vector.broadcast %178 : vector<1x16x16xf32> to vector<4x16x16xf32>
    %180 = arith.addf %177, %179 : vector<4x16x16xf32>
    %cst_49 = arith.constant dense<0xFF800000> : vector<4x16xf32>
    %181 = vector.multi_reduction <maximumf>, %180, %cst_49 [2] : vector<4x16x16xf32> to vector<4x16xf32>
    %182 = vector.shape_cast %181 : vector<4x16xf32> to vector<4x16x1xf32>
    %183 = vector.broadcast %182 : vector<4x16x1xf32> to vector<4x16x16xf32>
    %184 = arith.subf %180, %183 : vector<4x16x16xf32>
    %185 = math.exp %184 : vector<4x16x16xf32>
    %cst_50 = arith.constant dense<0.000000e+00> : vector<4x16xf32>
    %186 = vector.multi_reduction <add>, %185, %cst_50 [2] : vector<4x16x16xf32> to vector<4x16xf32>
    %187 = vector.shape_cast %186 : vector<4x16xf32> to vector<4x16x1xf32>
    %188 = tpu.reciprocal %187 {approx = true} : vector<4x16x1xf32> -> vector<4x16x1xf32>
    %189 = vector.broadcast %188 : vector<4x16x1xf32> to vector<4x16x16xf32>
    %190 = arith.mulf %185, %189 : vector<4x16x16xf32>
    %191 = arith.truncf %190 : vector<4x16x16xf32> to vector<4x16x16xbf16>
    "tpu.trace_start"() <{level = 10 : i32, message = "hqk,hkd->hqd"}> : () -> ()
    %cst_51 = arith.constant dense<0.000000e+00> : vector<4x16x8xf32>
    %192 = tpu.matmul %191, %176, %cst_51 {dimension_numbers = #tpu.dot_dimension_numbers<[2], [1], [1], [2], [0, 0, 0, 1, 1, 2], [0], [0]>} : vector<4x16x16xbf16>, vector<4x16x8xbf16>, vector<4x16x8xf32> -> vector<4x16x8xf32>
    "tpu.trace_stop"() : () -> ()
    %193 = vector.extract_strided_slice %192 {offsets = [0, 0, 0], sizes = [1, 16, 8], strides = [1, 1, 1]} : vector<4x16x8xf32> to vector<1x16x8xf32>
    %194 = vector.shape_cast %193 : vector<1x16x8xf32> to vector<16x8xf32>
    %195 = vector.extract_strided_slice %192 {offsets = [1, 0, 0], sizes = [1, 16, 8], strides = [1, 1, 1]} : vector<4x16x8xf32> to vector<1x16x8xf32>
    %196 = vector.shape_cast %195 : vector<1x16x8xf32> to vector<16x8xf32>
    %197 = vector.extract_strided_slice %192 {offsets = [2, 0, 0], sizes = [1, 16, 8], strides = [1, 1, 1]} : vector<4x16x8xf32> to vector<1x16x8xf32>
    %198 = vector.shape_cast %197 : vector<1x16x8xf32> to vector<16x8xf32>
    %199 = vector.extract_strided_slice %192 {offsets = [3, 0, 0], sizes = [1, 16, 8], strides = [1, 1, 1]} : vector<4x16x8xf32> to vector<1x16x8xf32>
    %200 = vector.shape_cast %199 : vector<1x16x8xf32> to vector<16x8xf32>
    %201 = tpu.concatenate %194, %196, %198, %200 in 1 : vector<16x8xf32>, vector<16x8xf32>, vector<16x8xf32>, vector<16x8xf32> -> vector<16x32xf32>
    %202 = arith.truncf %201 : vector<16x32xf32> to vector<16x32xbf16>
    %cst_52 = arith.constant dense<0.000000e+00> : vector<16x32xf32>
    %203 = tpu.matmul %202, %148, %cst_52 {dimension_numbers = #tpu.dot_dimension_numbers<[1], [0], [0], [1], [0, 0, 1, 1], [], []>} : vector<16x32xbf16>, vector<32x32xbf16>, vector<16x32xf32> -> vector<16x32xf32>
    %204 = vector.broadcast %149 : vector<1x32xf32> to vector<16x32xf32>
    %205 = arith.addf %203, %204 : vector<16x32xf32>
    %206 = arith.addf %102, %205 : vector<16x32xf32>
    %207 = vector.extract_strided_slice %2 {offsets = [2, 0], sizes = [1, 32], strides = [1, 1]} : vector<3x32xf32> to vector<1x32xf32>
    %208 = vector.shape_cast %207 : vector<1x32xf32> to vector<32xf32>
    %209 = vector.extract_strided_slice %3 {offsets = [2, 0], sizes = [1, 32], strides = [1, 1]} : vector<3x32xf32> to vector<1x32xf32>
    %210 = vector.shape_cast %209 : vector<1x32xf32> to vector<32xf32>
    %cst_53 = arith.constant dense<0.000000e+00> : vector<16xf32>
    %211 = vector.multi_reduction <add>, %206, %cst_53 [1] : vector<16x32xf32> to vector<16xf32>
    %212 = vector.shape_cast %211 : vector<16xf32> to vector<16x1xf32>
    %cst_54 = arith.constant 3.200000e+01 : f32
    %213 = vector.broadcast %cst_54 : f32 to vector<16x1xf32>
    %214 = arith.divf %212, %213 : vector<16x1xf32>
    %215 = vector.broadcast %214 : vector<16x1xf32> to vector<16x32xf32>
    %216 = arith.subf %206, %215 : vector<16x32xf32>
    %217 = arith.mulf %216, %216 : vector<16x32xf32>
    %cst_55 = arith.constant dense<0.000000e+00> : vector<16xf32>
    %218 = vector.multi_reduction <add>, %217, %cst_55 [1] : vector<16x32xf32> to vector<16xf32>
    %219 = vector.shape_cast %218 : vector<16xf32> to vector<16x1xf32>
    %cst_56 = arith.constant 3.100000e+01 : f32
    %220 = vector.broadcast %cst_56 : f32 to vector<16x1xf32>
    %221 = arith.divf %219, %220 : vector<16x1xf32>
    %222 = math.sqrt %221 : vector<16x1xf32>
    %cst_57 = arith.constant 9.99999997E-7 : f32
    %223 = vector.broadcast %cst_57 : f32 to vector<16x1xf32>
    %224 = arith.addf %222, %223 : vector<16x1xf32>
    %225 = tpu.reciprocal %224 {approx = true} : vector<16x1xf32> -> vector<16x1xf32>
    %226 = vector.shape_cast %208 : vector<32xf32> to vector<1x32xf32>
    %227 = vector.broadcast %214 : vector<16x1xf32> to vector<16x32xf32>
    %228 = arith.subf %206, %227 : vector<16x32xf32>
    %229 = vector.broadcast %226 : vector<1x32xf32> to vector<16x32xf32>
    %230 = arith.mulf %229, %228 : vector<16x32xf32>
    %231 = vector.broadcast %225 : vector<16x1xf32> to vector<16x32xf32>
    %232 = arith.mulf %230, %231 : vector<16x32xf32>
    %233 = vector.shape_cast %210 : vector<32xf32> to vector<1x32xf32>
    %234 = vector.broadcast %233 : vector<1x32xf32> to vector<16x32xf32>
    %235 = arith.addf %232, %234 : vector<16x32xf32>
    %236 = arith.truncf %235 : vector<16x32xf32> to vector<16x32xbf16>
    %c0_58 = arith.constant 0 : index
    %c0_59 = arith.constant 0 : index
    %237 = vector.load %arg16[%c0_58, %c0_59] : memref<32x2048xbf16, #tpu.memory_space<vmem>>, vector<32x2048xbf16>
    %cst_60 = arith.constant dense<0.000000e+00> : vector<16x2048xf32>
    %238 = tpu.matmul %236, %237, %cst_60 {dimension_numbers = #tpu.dot_dimension_numbers<[1], [0], [0], [1], [0, 0, 1, 1], [], []>} : vector<16x32xbf16>, vector<32x2048xbf16>, vector<16x2048xf32> -> vector<16x2048xf32>
    %c0_61 = arith.constant 0 : index
    %c0_62 = arith.constant 0 : index
    %239 = vector.load %arg17[%c0_61, %c0_62] : memref<1x2048xf32, #tpu.memory_space<vmem>>, vector<1x2048xf32>
    %240 = vector.broadcast %239 : vector<1x2048xf32> to vector<16x2048xf32>
    %241 = arith.addf %238, %240 : vector<16x2048xf32>
    %cst_63 = arith.constant 0.000000e+00 : f32
    %242 = vector.broadcast %cst_63 : f32 to vector<16x2048xf32>
    %243 = arith.maximumf %241, %242 : vector<16x2048xf32>
    %244 = arith.truncf %243 : vector<16x2048xf32> to vector<16x2048xbf16>
    %c0_64 = arith.constant 0 : index
    %c0_65 = arith.constant 0 : index
    %245 = vector.load %arg18[%c0_64, %c0_65] : memref<2048x32xbf16, #tpu.memory_space<vmem>>, vector<2048x32xbf16>
    %cst_66 = arith.constant dense<0.000000e+00> : vector<16x32xf32>
    %246 = tpu.matmul %244, %245, %cst_66 {dimension_numbers = #tpu.dot_dimension_numbers<[1], [0], [0], [1], [0, 0, 1, 1], [], []>} : vector<16x2048xbf16>, vector<2048x32xbf16>, vector<16x32xf32> -> vector<16x32xf32>
    %c0_67 = arith.constant 0 : index
    %c0_68 = arith.constant 0 : index
    %247 = vector.load %arg19[%c0_67, %c0_68] : memref<1x32xf32, #tpu.memory_space<vmem>>, vector<1x32xf32>
    %248 = vector.broadcast %247 : vector<1x32xf32> to vector<16x32xf32>
    %249 = arith.addf %246, %248 : vector<16x32xf32>
    %250 = arith.addf %206, %249 : vector<16x32xf32>
    %c0_69 = arith.constant 0 : index
    %c0_70 = arith.constant 0 : index
    %251 = vector.load %arg20[%c0_69, %c0_70] : memref<16x32xf32, #tpu.memory_space<vmem>>, vector<16x32xf32>
    tpu.vector_store %arg20[%c0_69, %c0_70], %250 {strides = array<i32>} : memref<16x32xf32, #tpu.memory_space<vmem>>, vector<16x32xf32>,
    return
  }
}

</mosaic_0001>

<bundles_post_ra>
// kernel: tpu_custom_call.1
= control target key start
LH: loop header
LB: loop body
LE: loop exit
PB: predicated region body
PF: predicated region fallthrough
CT: control target
= control target key end

     0   :  { %s5621_s0 = inlined_call_operand.vmem [shape: f32[16,32], index: 0, kind: input, shape index: {}]   ;;  %s5622_s1 = inlined_call_operand.vmem [shape: bf16[16,32], index: 1, kind: input, shape index: {}]   ;;  %s5623_s2 = inlined_call_operand.vmem [shape: f32[16,16], index: 2, kind: input, shape index: {}]   ;;  %s5624_s3 = inlined_call_operand.vmem [shape: f32[16,16], index: 3, kind: input, shape index: {}]   ;;  %s5625_s4 = inlined_call_operand.vmem [shape: f32[3,32], index: 4, kind: input, shape index: {}]   ;;  %s5626_s5 = inlined_call_operand.vmem [shape: f32[3,32], index: 5, kind: input, shape index: {}]   ;;  %s5627_s6 = inlined_call_operand.vmem [shape: bf16[32,96], index: 6, kind: input, shape index: {}]   ;;  %s5628_s7 = inlined_call_operand.vmem [shape: f32[1,96], index: 7, kind: input, shape index: {}]   ;;  %s5629_s8 = inlined_call_operand.vmem [shape: bf16[32,32], index: 8, kind: input, shape index: {}]   ;;  %s5630_s9 = inlined_call_operand.vmem [shape: f32[1,32], index: 9, kind: input, shape index: {}]   ;;  %s5631_s10 = inlined_call_operand.vmem [shape: bf16[32,32], index: 10, kind: input, shape index: {}]   ;;  %s5632_s11 = inlined_call_operand.vmem [shape: f32[1,32], index: 11, kind: input, shape index: {}]   ;;  %s5633_s12 = inlined_call_operand.vmem [shape: bf16[32,64], index: 12, kind: input, shape index: {}]   ;;  %s5634_s13 = inlined_call_operand.vmem [shape: f32[1,64], index: 13, kind: input, shape index: {}]   ;;  %s5635_s14 = inlined_call_operand.vmem [shape: bf16[32,32], index: 14, kind: input, shape index: {}]   ;;  %s5636_s15 = inlined_call_operand.vmem [shape: f32[1,32], index: 15, kind: input, shape index: {}]   ;;  %s5637_s16 = inlined_call_operand.vmem [shape: bf16[32,2048], index: 16, kind: input, shape index: {}]   ;;  %s5638_s17 = inlined_call_operand.vmem [shape: f32[1,2048], index: 17, kind: input, shape index: {}]   ;;  %s5639_s18 = inlined_call_operand.vmem [shape: bf16[2048,32], index: 18, kind: input, shape index: {}]   ;;  %s5640_s19 = inlined_call_operand.vmem [shape: f32[1,32], index: 19, kind: input, shape index: {}]   ;;  %s5641_s20 = inlined_call_operand.hbm [shape: f32[16,32], index: 20, kind: output, shape index: {}]  }
   0x1   :  { %5646 = sst [smem:[#allocation5_spill]] %s5621_s0 }
   0x2   :  { %5647 = sst [smem:[#allocation6_spill]] %s5622_s1 }
   0x3   :  { %5648 = sst [smem:[#allocation7_spill]] %s5623_s2 }
   0x4   :  { %5649 = sst [smem:[#allocation8_spill]] %s5624_s3 }
   0x5   :  { %5650 = sst [smem:[#allocation9_spill]] %s5625_s4 }
   0x6   :  { %s5651_s23 = sld [smem:[#allocation5_spill]]  ;;  %vm73_vm0 = vcmask 261120  }
   0xc   :  { %v67_v0 = vld [vmem:[%s5651_s23] sm:$0xff]  ;;  %v68_v1 = vld [vmem:[%s5651_s23 + $0x8] sm:$0xff] }
   0xd   :  { %v74_v2 = vsel %vm73_vm0, %v67_v0, 0.0  ;;  %v77_v3 = vsel %vm73_vm0, %v68_v1, 0.0 }
   0xe   :  { %75 = vadd.xlane.f32.xlu0 %v74_v2 }
  0x12   :  { %78 = vadd.xlane.f32.xlu0 %v77_v3 }
  0x13   :  { %25 = vsyncpa [#allocation3], 0  ;;  %v4274_v14 = vld [vmem:[%s5627_s6] sm:$0xff]   ;;  %v4529_v15 = vmov 0.0   ;;  %vm4530_vm1 = vmmov 0   ;;  %v4275_v16 = vld [vmem:[%s5627_s6 + $0x8] sm:$0xff]   ;;  %v114_v23 = vlaneseq }
  0x14   :  { %4095 = vmatprep.subr.bf16.mxu0 %v4529_v15  ;;  %4099 = vmatprep.mubr.msk.bf16.mxu0 %vm4530_vm1, %v4529_v15  ;;  %s5652_s4 = sld [smem:[#allocation9_spill]]  ;;  %v4686_v39 = vld [vmem:[%s5626_s5] sm:$0x7]  ;;  %s4531_s1 = smov 112   ;;  %vm213_vm6 = vcmask 64512   ;;  %vm408_vm7 = vcmask 130048  }
  0x15   :  { %4096 = vmatpush3.bf16.msra.mxu0 %v4274_v14  ;;  %4103 = vmatprep.subr.bf16.mxu1 %v4529_v15  ;;  %v4671_v30 = vshrl.u32 %v114_v23, 7  ;;  %v3666_v49 = vld [vmem:[%s5628_s7] ss:$0 sm:$0xff]  ;;  %s4532_s22 = smov 120   ;;  %s4533_s24 = smov 104   ;;  %vm717_vm8 = vcmask 195584  }
  0x16   :  { %4097 = vmatprep.subr.bf16.mxu0 %v4529_v15  ;;  %4105 = vmatprep.mubr.msk.bf16.mxu1 %vm4530_vm1, %v4529_v15  ;;  %s4534_s7 = smov 96   ;;  %s5653_s3 = sld [smem:[#allocation7_spill]] }
  0x17   :  { %v4674_v35 = vsub.s32 0, %v4671_v30  ;;  %s4535_s6 = smov 64   ;;  %s4536_s21 = smov 8  }
  0x18   :  { %s4537_s2 = smov 16   ;;  %s5654_s28 = sld [smem:[#allocation6_spill]] }
  0x19   :  { %4098 = vmatpush3.bf16.msra.mxu0 %v4275_v16  ;;  %v125_v43 = vrot.slane %v4686_v39, %v4674_v35 }
  0x1a   :  { %4109 = vmatprep.subr.bf16.mxu0 %v4529_v15  ;;  %v4679_v36 = vld [vmem:[%s5652_s4] sm:$0x7] }
  0x1b   :  { %v117_v37 = vrot.slane %v4679_v36, %v4674_v35 }
  0x9b   :  { %v76_v4 = vpop.xlane.xlu0 %75 }
  0x9c   :  { %v81_v5 = vmul.f32 0.03125, %v76_v4  ;;  %v197_v4 = vld [vmem:[%s5653_s3] sm:$0xff] }
  0x9e   :  { %v83_v6 = vsub.f32 %v67_v0, %v81_v5 }
  0x9f   :  { %v79_v7 = vpop.xlane.xlu0 %78 }
  0xa0   :  { %v82_v8 = vmul.f32 0.03125, %v79_v7  ;;  %v85_v9 = vmul.f32 %v83_v6, %v83_v6  ;;  %v118_v40 = vmul.f32 %v117_v37, %v83_v6  ;;  %v198_v6 = vld [vmem:[%s5653_s3 + $0x8] sm:$0xff] }
  0xa2   :  { %v84_v10 = vsub.f32 %v68_v1, %v82_v8  ;;  %v87_v11 = vsel %vm73_vm0, %v85_v9, 0.0 }
  0xa3   :  { %88 = vadd.xlane.f32.xlu1 %v87_v11 }
  0xa4   :  { %v86_v12 = vmul.f32 %v84_v10, %v84_v10  ;;  %v119_v41 = vmul.f32 %v117_v37, %v84_v10 }
  0xa6   :  { %v90_v13 = vsel %vm73_vm0, %v86_v12, 0.0 }
  0xa7   :  { %91 = vadd.xlane.f32.xlu1 %v90_v13 }
 0x130   :  { %v89_v17 = vpop.xlane.xlu1 %88 }
 0x131   :  { %v94_v18 = vmul.f32 0.032258064, %v89_v17 }
 0x133   :  { %4413 = vrsqrt.f32 %v94_v18  ;;  %vm98_vm2 = vcmp.eq.f32.partialorder %v94_v18, inf  ;;  %v101_v24 = vand.u32 2147483648, %v94_v18  ;;  %vm100_vm3 = vcmp.eq.f32.partialorder %v94_v18, 0.0 }
 0x134   :  { %v92_v19 = vpop.xlane.xlu1 %91 }
 0x135   :  { %v95_v20 = vmul.f32 0.032258064, %v92_v19 }
 0x137   :  { %4415 = vrsqrt.f32 %v95_v20  ;;  %vm105_vm4 = vcmp.eq.f32.partialorder %v95_v20, inf  ;;  %v108_v31 = vand.u32 2147483648, %v95_v20  ;;  %vm107_vm5 = vcmp.eq.f32.partialorder %v95_v20, 0.0 }
 0x13d   :  { %v4414_v21 = vpop.eup %4413 }
 0x13e   :  { %v97_v22 = vmul.f32 %v4414_v21, %v94_v18 }
 0x140   :  { %v99_v25 = vsel %vm98_vm2, %v94_v18, %v97_v22 }
 0x141   :  { %v4416_v26 = vpop.eup %4415  ;;  %v102_v27 = vsel %vm100_vm3, %v101_v24, %v99_v25 }
 0x142   :  { %v110_v28 = vadd.f32 1e-06, %v102_v27  ;;  %v104_v29 = vmul.f32 %v4416_v26, %v95_v20 }
 0x144   :  { %4417 = vrcp.f32 %v110_v28  ;;  %v106_v32 = vsel %vm105_vm4, %v95_v20, %v104_v29 }
 0x145   :  { %v109_v33 = vsel %vm107_vm5, %v108_v31, %v106_v32 }
 0x146   :  { %v111_v34 = vadd.f32 1e-06, %v109_v33 }
 0x148   :  { %4419 = vrcp.f32 %v111_v34 }
 0x14e   :  { %v4418_v38 = vpop.eup %4417 }
 0x14f   :  { %v120_v42 = vmul.f32 %v4418_v38, %v118_v40 }
 0x151   :  { %v126_v46 = vadd.f32 %v125_v43, %v120_v42 }
 0x152   :  { %v4420_v44 = vpop.eup %4419 }
 0x153   :  { %v121_v45 = vmul.f32 %v4420_v44, %v119_v41 }
 0x155   :  { %v127_v47 = vadd.f32 %v125_v43, %v121_v45 }
 0x157   :  { %v128_v48 = vpack.c.bf16 %v127_v47, %v126_v46 }
 0x159   :  { %4100 = vmatmul.mubr.msk.bf16.vlgmr.msra.gmra.mrb[0].mxu0 %vm73_vm0, %v128_v48 }
 0x15a   :  { %4111 = vmatprep.mubr.msk.bf16.mxu0 %vm4530_vm1, %v4529_v15 }
 0x22c   :  { %v189_v50 = vpop.f32.mrb[0].mxu0 }
 0x22d   :  { %v4101_v51 = vpop.f32.mrb[1].mxu0  ;;  %v190_v53 = vadd.f32 %v3666_v49, %v189_v50 }
 0x22e   :  { %v192_v52 = vpop.f32.mrb[2].mxu0 }
 0x22f   :  { %v193_v54 = vadd.f32 %v3666_v49, %v192_v52  ;;  %v4102_v55 = vpop.f32.mrb[3].mxu0 }
 0x231   :  { %v4696_v56 = vpack.c.bf16 %v193_v54, %v190_v53 }
 0x233   :  { %207 = vrot.lane.b32.xlu1 %v4696_v56, %s4531_s1  ;;  %205 = vrot.lane.b32.xlu0 %v4696_v56, %s4532_s22 }
 0x237   :  { %209 = vrot.lane.b32.xlu1 %v4696_v56, %s4533_s24 }
 0x23b   :  { %211 = vrot.lane.b32.xlu1 %v4696_v56, %s4534_s7 }
 0x2a5   :  { %v4706_v57 = vpop.permute.xlu1 %207  ;;  %v4708_v58 = vpop.permute.xlu0 %205 }
 0x2a6   :  { %310 = vrot.lane.b32.xlu1 %v4706_v57, %s4534_s7  ;;  %261 = vrot.lane.b32.xlu0 %v4708_v58, %s4534_s7 }
 0x2a9   :  { %v4714_v59 = vpop.permute.xlu1 %209 }
 0x2aa   :  { %359 = vrot.lane.b32.xlu0 %v4714_v59, %s4534_s7 }
 0x2ad   :  { %v212_v60 = vpop.permute.xlu1 %211 }
 0x2ae   :  { %v218_v61 = vsel %vm213_vm6, %v212_v60, 0 }
 0x2af   :  { %4104 = vmatpush3.bf16.xpose.msra.mxu1 %v218_v61 }
 0x2b0   :  { %4115 = vmatprep.subr.bf16.mxu1 %v4529_v15 }
 0x2b6   :  { %4106 = vmatmul.mubr.msk.bf16.vlgmr.msra.gmra.mrb[0].mxu1 %vm213_vm6, %v4696_v56 }
 0x2b7   :  { %4117 = vmatprep.mubr.msk.bf16.mxu1 %vm4530_vm1, %v4529_v15 }
 0x318   :  { %v311_v62 = vpop.permute.xlu1 %310  ;;  %v262_v63 = vpop.permute.xlu0 %261 }
 0x319   :  { %v316_v0 = vsel %vm213_vm6, %v311_v62, 0  ;;  %v267_v1 = vsel %vm213_vm6, %v262_v63, 0 }
 0x31a   :  { %4110 = vmatpush3.bf16.xpose.msra.mxu0 %v267_v1  ;;  %4116 = vmatpush3.bf16.xpose.msra.mxu1 %v316_v0 }
 0x31b   :  { %4121 = vmatprep.subr.bf16.mxu0 %v4529_v15  ;;  %4127 = vmatprep.subr.bf16.mxu1 %v4529_v15 }
 0x31c   :  { %v360_v2 = vpop.permute.xlu0 %359 }
 0x31d   :  { %v365_v3 = vsel %vm213_vm6, %v360_v2, 0 }
 0x321   :  { %4112 = vmatmul.mubr.msk.bf16.vlgmr.msra.gmra.mrb[4].mxu0 %vm213_vm6, %v4708_v58  ;;  %4118 = vmatmul.mubr.msk.bf16.vlgmr.msra.gmra.mrb[4].mxu1 %vm213_vm6, %v4706_v57 }
 0x322   :  { %4122 = vmatpush3.bf16.xpose.msra.mxu0 %v365_v3  ;;  %4123 = vmatprep.mubr.msk.bf16.mxu0 %vm4530_vm1, %v4529_v15 }
 0x323   :  { %4129 = vmatprep.mubr.msk.bf16.mxu1 %vm4530_vm1, %v4529_v15  ;;  %4133 = vmatprep.subr.bf16.mxu0 %v4529_v15 }
 0x329   :  { %4124 = vmatmul.mubr.msk.bf16.vlgmr.msra.gmra.mrb[8].mxu0 %vm213_vm6, %v4714_v59 }
 0x32a   :  { %4135 = vmatprep.mubr.msk.bf16.mxu0 %vm4530_vm1, %v4529_v15 }
 0x389   :  { %v254_v5 = vpop.f32.mrb[0].mxu1 }
 0x38a   :  { %v255_v7 = vadd.f32 %v254_v5, %v197_v4  ;;  %v4107_v8 = vpop.f32.mrb[1].mxu1 }
 0x38b   :  { %v257_v9 = vpop.f32.mrb[2].mxu1 }
 0x38c   :  { %v258_v10 = vadd.f32 %v257_v9, %v198_v6  ;;  %v4108_v11 = vpop.f32.mrb[3].mxu1  ;;  %v409_v12 = vsel %vm408_vm7, %v255_v7, -inf }
 0x38d   :  { %410 = vmax.xlane.f32.xlu1 %v409_v12 }
 0x38e   :  { %v412_v13 = vsel %vm408_vm7, %v258_v10, -inf }
 0x38f   :  { %413 = vmax.xlane.f32.xlu0 %v412_v13 }
 0x3f4   :  { %v303_v14 = vpop.f32.mrb[4].mxu0  ;;  %v352_v16 = vpop.f32.mrb[4].mxu1 }
 0x3f5   :  { %v304_v17 = vadd.f32 %v303_v14, %v197_v4  ;;  %v353_v18 = vadd.f32 %v352_v16, %v197_v4  ;;  %v4113_v19 = vpop.f32.mrb[5].mxu0  ;;  %v4119_v20 = vpop.f32.mrb[5].mxu1 }
 0x3f6   :  { %v306_v21 = vpop.f32.mrb[6].mxu0  ;;  %v355_v22 = vpop.f32.mrb[6].mxu1 }
 0x3f7   :  { %v307_v23 = vadd.f32 %v306_v21, %v198_v6  ;;  %v4114_v24 = vpop.f32.mrb[7].mxu0  ;;  %v4120_v25 = vpop.f32.mrb[7].mxu1  ;;  %v421_v26 = vsel %vm408_vm7, %v353_v18, -inf  ;;  %v415_v27 = vsel %vm408_vm7, %v304_v17, -inf  ;;  %v356_v28 = vadd.f32 %v355_v22, %v198_v6 }
 0x3f8   :  { %422 = vmax.xlane.f32.xlu1 %v421_v26  ;;  %416 = vmax.xlane.f32.xlu0 %v415_v27 }
 0x3f9   :  { %v418_v29 = vsel %vm408_vm7, %v307_v23, -inf  ;;  %v424_v40 = vsel %vm408_vm7, %v356_v28, -inf }
 0x3fc   :  { %419 = vmax.xlane.f32.xlu0 %v418_v29  ;;  %v401_v31 = vpop.f32.mrb[8].mxu0 }
 0x3fd   :  { %v402_v32 = vadd.f32 %v401_v31, %v197_v4  ;;  %v4125_v33 = vpop.f32.mrb[9].mxu0 }
 0x3fe   :  { %v404_v34 = vpop.f32.mrb[10].mxu0 }
 0x3ff   :  { %v405_v37 = vadd.f32 %v404_v34, %v198_v6  ;;  %v4126_v38 = vpop.f32.mrb[11].mxu0  ;;  %v427_v41 = vsel %vm408_vm7, %v402_v32, -inf }
 0x400   :  { %425 = vmax.xlane.f32.xlu0 %v424_v40  ;;  %428 = vmax.xlane.f32.xlu1 %v427_v41 }
 0x401   :  { %v430_v42 = vsel %vm408_vm7, %v405_v37, -inf }
 0x404   :  { %431 = vmax.xlane.f32.xlu0 %v430_v42 }
 0x411   :  { %501 = vrot.lane.b32.xlu1 %v4696_v56, %s4535_s6 }
 0x41a   :  { %v411_v43 = vpop.xlane.xlu1 %410 }
 0x41b   :  { %v433_v46 = vsub.f32 %v255_v7, %v411_v43 }
 0x41c   :  { %v414_v44 = vpop.xlane.xlu0 %413 }
 0x41d   :  { %v434_v45 = vsub.f32 %v258_v10, %v414_v44  ;;  %v441_v48 = vmul.f32 1.442695, %v433_v46 }
 0x41f   :  { %v443_v47 = vmul.f32 1.442695, %v434_v45 }
 0x421   :  { %4421 = vpow2.f32 %v443_v47 }
 0x422   :  { %4423 = vpow2.f32 %v441_v48 }
 0x42b   :  { %v4422_v49 = vpop.eup %4421 }
 0x42c   :  { %v460_v50 = vsel %vm408_vm7, %v4422_v49, 0.0  ;;  %v4424_v51 = vpop.eup %4423 }
 0x42d   :  { %461 = vadd.xlane.f32.xlu0 %v460_v50  ;;  %v457_v52 = vsel %vm408_vm7, %v4424_v51, 0.0 }
 0x435   :  { %458 = vadd.xlane.f32.xlu1 %v457_v52 }
 0x485   :  { %v423_v53 = vpop.xlane.xlu1 %422  ;;  %v417_v54 = vpop.xlane.xlu0 %416 }
 0x486   :  { %v437_v55 = vsub.f32 %v353_v18, %v423_v53  ;;  %v435_v56 = vsub.f32 %v304_v17, %v417_v54 }
 0x488   :  { %v445_v60 = vmul.f32 1.442695, %v435_v56  ;;  %v449_v61 = vmul.f32 1.442695, %v437_v55 }
 0x489   :  { %v420_v62 = vpop.xlane.xlu0 %419 }
 0x48a   :  { %v436_v63 = vsub.f32 %v307_v23, %v420_v62  ;;  %4425 = vpow2.f32 %v445_v60 }
 0x48b   :  { %4427 = vpow2.f32 %v449_v61 }
 0x48c   :  { %v447_v0 = vmul.f32 1.442695, %v436_v63  ;;  %v4276_v63 = vld [vmem:[%s5629_s8] sm:$0xff]  }
 0x48d   :  { %v426_v1 = vpop.xlane.xlu0 %425  ;;  %v429_v2 = vpop.xlane.xlu1 %428 }
 0x48e   :  { %4429 = vpow2.f32 %v447_v0  ;;  %v438_v3 = vsub.f32 %v356_v28, %v426_v1  ;;  %v439_v4 = vsub.f32 %v402_v32, %v429_v2  ;;  %v4277_v2 = vld [vmem:[%s5629_s8 + $0x8] sm:$0xff]   ;;  %s4538_s8 = smov 24  }
 0x490   :  { %v451_v5 = vmul.f32 1.442695, %v438_v3  ;;  %v453_v6 = vmul.f32 1.442695, %v439_v4 }
 0x491   :  { %v502_v7 = vpop.permute.xlu1 %501  ;;  %v432_v8 = vpop.xlane.xlu0 %431 }
 0x492   :  { %4431 = vpow2.f32 %v451_v5  ;;  %v440_v9 = vsub.f32 %v405_v37, %v432_v8  ;;  %4128 = vmatpush3.bf16.msra.mxu1 %v502_v7 }
 0x493   :  { %4433 = vpow2.f32 %v453_v6  ;;  %4139 = vmatprep.subr.bf16.mxu1 %v4529_v15 }
 0x494   :  { %v455_v10 = vmul.f32 1.442695, %v440_v9  ;;  %v4426_v11 = vpop.eup %4425 }
 0x495   :  { %v463_v12 = vsel %vm408_vm7, %v4426_v11, 0.0  ;;  %v4428_v13 = vpop.eup %4427 }
 0x496   :  { %4435 = vpow2.f32 %v455_v10  ;;  %464 = vadd.xlane.f32.xlu1 %v463_v12  ;;  %v469_v17 = vsel %vm408_vm7, %v4428_v13, 0.0 }
 0x498   :  { %v4430_v14 = vpop.eup %4429 }
 0x499   :  { %v466_v16 = vsel %vm408_vm7, %v4430_v14, 0.0 }
 0x49a   :  { %467 = vadd.xlane.f32.xlu0 %v466_v16  ;;  %470 = vadd.xlane.f32.xlu1 %v469_v17 }
 0x49c   :  { %v4432_v18 = vpop.eup %4431 }
 0x49d   :  { %v4434_v19 = vpop.eup %4433  ;;  %v472_v20 = vsel %vm408_vm7, %v4432_v18, 0.0 }
 0x49e   :  { %v475_v21 = vsel %vm408_vm7, %v4434_v19, 0.0  ;;  %473 = vadd.xlane.f32.xlu0 %v472_v20 }
 0x49f   :  { %476 = vadd.xlane.f32.xlu1 %v475_v21 }
 0x4a0   :  { %v4436_v22 = vpop.eup %4435 }
 0x4a1   :  { %v478_v23 = vsel %vm408_vm7, %v4436_v22, 0.0 }
 0x4a2   :  { %479 = vadd.xlane.f32.xlu0 %v478_v23 }
 0x4b0   :  { %595 = vrot.lane.b32.xlu1 %v4706_v57, %s4535_s6 }
 0x4b4   :  { %642 = vrot.lane.b32.xlu1 %v4714_v59, %s4535_s6 }
 0x4b8   :  { %548 = vrot.lane.b32.xlu0 %v4708_v58, %s4535_s6 }
 0x4ba   :  { %v462_v24 = vpop.xlane.xlu0 %461 }
 0x4bb   :  { %4437 = vrcp.f32 %v462_v24 }
 0x4c2   :  { %v459_v25 = vpop.xlane.xlu1 %458 }
 0x4c3   :  { %4439 = vrcp.f32 %v459_v25 }
 0x4c5   :  { %v4438_v26 = vpop.eup %4437 }
 0x4c6   :  { %v490_v28 = vmul.f32 %v4438_v26, %v4422_v49 }
 0x4cd   :  { %v4440_v27 = vpop.eup %4439 }
 0x4ce   :  { %v489_v29 = vmul.f32 %v4440_v27, %v4424_v51 }
 0x4d0   :  { %v497_v31 = vpack.c.bf16 %v490_v28, %v489_v29 }
 0x4d2   :  { %4130 = vmatmul.mubr.msk.bf16.vlgmr.msra.gmra.mrb[8].mxu1 %vm408_vm7, %v497_v31 }
 0x4d3   :  { %4141 = vmatprep.mubr.msk.bf16.mxu1 %vm4530_vm1, %v4529_v15 }
 0x523   :  { %v465_v57 = vpop.xlane.xlu1 %464 }
 0x524   :  { %4441 = vrcp.f32 %v465_v57 }
 0x527   :  { %v468_v59 = vpop.xlane.xlu0 %467  ;;  %v471_v32 = vpop.xlane.xlu1 %470 }
 0x528   :  { %4443 = vrcp.f32 %v468_v59 }
 0x529   :  { %4445 = vrcp.f32 %v471_v32  ;;  %v3678_v32 = vld [vmem:[%s5630_s9] ss:$0 sm:$0xff] }
 0x52b   :  { %v474_v58 = vpop.xlane.xlu0 %473 }
 0x52c   :  { %v477_v33 = vpop.xlane.xlu1 %476  ;;  %4447 = vrcp.f32 %v474_v58 }
 0x52d   :  { %4449 = vrcp.f32 %v477_v33 }
 0x52e   :  { %v4442_v37 = vpop.eup %4441 }
 0x52f   :  { %v480_v34 = vpop.xlane.xlu0 %479  ;;  %v491_v41 = vmul.f32 %v4442_v37, %v4426_v11 }
 0x530   :  { %v596_v38 = vpop.permute.xlu1 %595  ;;  %4451 = vrcp.f32 %v480_v34 }
 0x531   :  { %4140 = vmatpush3.bf16.msra.mxu1 %v596_v38  ;;  %v4501_v38 = vld [vmem:[%s5651_s23] sm:$0xff] }
 0x532   :  { %v4444_v40 = vpop.eup %4443  ;;  %4151 = vmatprep.subr.bf16.mxu1 %v4529_v15 }
 0x533   :  { %v492_v42 = vmul.f32 %v4444_v40, %v4430_v14  ;;  %v549_v43 = vpop.permute.xlu0 %548  ;;  %v4446_v44 = vpop.eup %4445 }
 0x534   :  { %4134 = vmatpush3.bf16.msra.mxu0 %v549_v43  ;;  %v493_v47 = vmul.f32 %v4446_v44, %v4428_v13  ;;  %v643_v49 = vpop.permute.xlu1 %642  ;;  %v4502_v43 = vld [vmem:[%s5651_s23 + $0x8] sm:$0xff] }
 0x535   :  { %v498_v45 = vpack.c.bf16 %v492_v42, %v491_v41  ;;  %4145 = vmatprep.subr.bf16.mxu0 %v4529_v15 }
 0x536   :  { %v4448_v46 = vpop.eup %4447 }
 0x537   :  { %v494_v48 = vmul.f32 %v4448_v46, %v4432_v18  ;;  %4136 = vmatmul.mubr.msk.bf16.vlgmr.msra.gmra.mrb[12].mxu0 %vm408_vm7, %v498_v45  ;;  %v4450_v50 = vpop.eup %4449 }
 0x538   :  { %4146 = vmatpush3.bf16.msra.mxu0 %v643_v49  ;;  %4147 = vmatprep.mubr.msk.bf16.mxu0 %vm4530_vm1, %v4529_v15  ;;  %v495_v53 = vmul.f32 %v4450_v50, %v4434_v19 }
 0x539   :  { %v499_v51 = vpack.c.bf16 %v494_v48, %v493_v47  ;;  %4159 = vmatprep.subr.bf16.mxu0 %v4529_v15 }
 0x53a   :  { %v4452_v52 = vpop.eup %4451 }
 0x53b   :  { %v496_v54 = vmul.f32 %v4452_v52, %v4436_v22  ;;  %4142 = vmatmul.mubr.msk.bf16.vlgmr.msra.gmra.mrb[12].mxu1 %vm408_vm7, %v499_v51 }
 0x53c   :  { %4155 = vmatprep.mubr.msk.bf16.mxu1 %vm4530_vm1, %v4529_v15  ;;  %4152 = vmatpush3.bf16.msra.mxu1 %v4276_v63  ;;  %v4282_v63 = vld [vmem:[%s5631_s10 + $0x8] sm:$0xff]  }
 0x53d   :  { %v500_v55 = vpack.c.bf16 %v496_v54, %v495_v53  ;;  %4153 = vmatprep.subr.bf16.mxu1 %v4529_v15 }
 0x53f   :  { %4148 = vmatmul.mubr.msk.bf16.vlgmr.msra.gmra.mrb[16].mxu0 %vm408_vm7, %v500_v55 }
 0x540   :  { %4163 = vmatprep.mubr.msk.bf16.mxu0 %vm4530_vm1, %v4529_v15  ;;  %4154 = vmatpush3.bf16.msra.mxu1 %v4277_v2 }
 0x541   :  { %4167 = vmatprep.subr.bf16.mxu1 %v4529_v15 }
 0x5a5   :  { %v541_v56 = vpop.f32.mrb[8].mxu1 }
 0x5a6   :  { %v4131_v60 = vpop.f32.mrb[9].mxu1 }
 0x5a7   :  { %v544_v61 = vpop.f32.mrb[10].mxu1  ;;  %v4278_v60 = vld [vmem:[%s5633_s12] sm:$0xff]  }
 0x5a8   :  { %v4132_v62 = vpop.f32.mrb[11].mxu1 }
 0x5a9   :  { %v4281_v62 = vld [vmem:[%s5631_s10] sm:$0xff]  }
 0x5aa   :  { %4160 = vmatpush3.bf16.msra.mxu0 %v4281_v62 }
 0x5ab   :  { %4161 = vmatprep.subr.bf16.mxu0 %v4529_v15 }
 0x5ae   :  { %4162 = vmatpush3.bf16.msra.mxu0 %v4282_v63 }
 0x5af   :  { %4175 = vmatprep.subr.bf16.mxu0 %v4529_v15 }
 0x60a   :  { %v588_v0 = vpop.f32.mrb[12].mxu0 }
 0x60b   :  { %v4137_v1 = vpop.f32.mrb[13].mxu0 }
 0x60c   :  { %v591_v3 = vpop.f32.mrb[14].mxu0 }
 0x60d   :  { %v4244_v4 = vpack.i.bf16 %v591_v3, %v588_v0  ;;  %v4138_v5 = vpop.f32.mrb[15].mxu0  ;;  %v4280_v0 = vld [vmem:[%s5654_s28] sm:$0xff]  }
 0x60e   :  { %v635_v6 = vpop.f32.mrb[12].mxu1 }
 0x60f   :  { %v4143_v7 = vpop.f32.mrb[13].mxu1  ;;  %4245 = vrot.lane.b32.xlu1 %v4244_v4, %s4536_s21 }
 0x610   :  { %v638_v8 = vpop.f32.mrb[14].mxu1 }
 0x611   :  { %v4249_v9 = vpack.i.bf16 %v638_v8, %v635_v6  ;;  %v4144_v10 = vpop.f32.mrb[15].mxu1 }
 0x612   :  { %v682_v11 = vpop.f32.mrb[16].mxu0 }
 0x613   :  { %4250 = vrot.lane.b32.xlu0 %v4249_v9, %s4537_s2  ;;  %v4149_v12 = vpop.f32.mrb[17].mxu0 }
 0x614   :  { %v685_v13 = vpop.f32.mrb[18].mxu0 }
 0x615   :  { %v4254_v14 = vpack.i.bf16 %v685_v13, %v682_v11  ;;  %v4150_v16 = vpop.f32.mrb[19].mxu0 }
 0x617   :  { %4255 = vrot.lane.b32.xlu1 %v4254_v14, %s4538_s8 }
 0x681   :  { %v4246_v17 = vpop.permute.xlu1 %4245 }
 0x682   :  { %v4248_v19 = vunpack.i.h.bf16 %v4246_v17  ;;  %v4247_v20 = vunpack.i.l.bf16 %v4246_v17 }
 0x684   :  { %v714_v24 = vsel %vm213_vm6, %v544_v61, %v4248_v19  ;;  %v713_v25 = vsel %vm213_vm6, %v541_v56, %v4247_v20  ;;  %v4279_v61 = vld [vmem:[%s5633_s12 + $0x8] sm:$0xff]  }
 0x685   :  { %v4251_v18 = vpop.permute.xlu0 %4250 }
 0x686   :  { %v4253_v21 = vunpack.i.h.bf16 %v4251_v18  ;;  %v4252_v22 = vunpack.i.l.bf16 %v4251_v18  ;;  %v4852_v18 = vsub.s32 1, %v4671_v30 }
 0x688   :  { %v715_v28 = vsel %vm408_vm7, %v713_v25, %v4252_v22  ;;  %v716_v29 = vsel %vm408_vm7, %v714_v24, %v4253_v21  ;;  %v826_v19 = vrot.slane %v4679_v36, %v4852_v18  ;;  %v834_v24 = vrot.slane %v4686_v39, %v4852_v18  ;;  %v3686_v36 = vld [vmem:[%s5634_s13] ss:$0 sm:$0xff] }
 0x689   :  { %v4256_v23 = vpop.permute.xlu1 %4255 }
 0x68a   :  { %v4258_v26 = vunpack.i.h.bf16 %v4256_v23  ;;  %v4257_v27 = vunpack.i.l.bf16 %v4256_v23 }
 0x68c   :  { %v719_v31 = vsel %vm717_vm8, %v716_v29, %v4258_v26  ;;  %v718_v57 = vsel %vm717_vm8, %v715_v28, %v4257_v27 }
 0x68d   :  { %v720_v59 = vpack.c.bf16 %v719_v31, %v718_v57 }
 0x68f   :  { %4156 = vmatmul.mubr.msk.bf16.vlgmr.msra.gmra.mrb[16].mxu1 %vm73_vm0, %v720_v59 }
 0x690   :  { %4171 = vmatprep.mubr.msk.bf16.mxu1 %vm4530_vm1, %v4529_v15  ;;  %4168 = vmatpush3.bf16.msra.mxu1 %v4278_v60 }
 0x691   :  { %4169 = vmatprep.subr.bf16.mxu1 %v4529_v15 }
 0x694   :  { %4170 = vmatpush3.bf16.msra.mxu1 %v4279_v61 }
 0x695   :  { %4181 = vmatprep.subr.bf16.mxu1 %v4529_v15 }
 0x697   :  { %4172 = vmatmul.mubr.msk.bf16.vlgmr.msra.gmra.mrb[20].mxu1 %vm73_vm0, %v4280_v0 }
 0x698   :  { %4183 = vmatprep.mubr.msk.bf16.mxu1 %vm4530_vm1, %v4529_v15 }
 0x762   :  { %v776_v58 = vpop.f32.mrb[16].mxu1 }
 0x763   :  { %v777_v33 = vadd.f32 %v3678_v32, %v776_v58  ;;  %v4157_v34 = vpop.f32.mrb[17].mxu1 }
 0x764   :  { %v779_v37 = vpop.f32.mrb[18].mxu1 }
 0x765   :  { %v4814_v40 = vadd.f32 %v4501_v38, %v777_v33  ;;  %v780_v41 = vadd.f32 %v3678_v32, %v779_v37  ;;  %v4158_v42 = vpop.f32.mrb[19].mxu1 }
 0x767   :  { %v4819_v44 = vadd.f32 %v4502_v43, %v780_v41  ;;  %v785_v45 = vsel %vm73_vm0, %v4814_v40, 0.0  ;;  %v3682_v41 = vld [vmem:[%s5632_s11] ss:$0 sm:$0xff] }
 0x768   :  { %786 = vadd.xlane.f32.xlu0 %v785_v45 }
 0x769   :  { %v788_v46 = vsel %vm73_vm0, %v4819_v44, 0.0 }
 0x76a   :  { %789 = vadd.xlane.f32.xlu1 %v788_v46  ;;  %v971_v31 = vpop.f32.mrb[20].mxu1 }
 0x76b   :  { %v972_v57 = vadd.f32 %v3686_v36, %v971_v31  ;;  %v4173_v59 = vpop.f32.mrb[21].mxu1 }
 0x76c   :  { %v974_v32 = vpop.f32.mrb[22].mxu1 }
 0x76d   :  { %v975_v58 = vadd.f32 %v3686_v36, %v974_v32  ;;  %v4174_v39 = vpop.f32.mrb[23].mxu1 }
 0x76f   :  { %v4864_v33 = vpack.c.bf16 %v975_v58, %v972_v57 }
 0x771   :  { %v1004_v34 = vsel %vm213_vm6, %v4864_v33, 0 }
 0x77b   :  { %996 = vrot.lane.b32.xlu1 %v4864_v33, %s4531_s1 }
 0x7f5   :  { %v787_v47 = vpop.xlane.xlu0 %786 }
 0x7f6   :  { %v791_v48 = vmul.f32 0.03125, %v787_v47 }
 0x7f7   :  { %v790_v49 = vpop.xlane.xlu1 %789 }
 0x7f8   :  { %v793_v50 = vsub.f32 %v4814_v40, %v791_v48  ;;  %v792_v51 = vmul.f32 0.03125, %v790_v49 }
 0x7fa   :  { %v794_v52 = vsub.f32 %v4819_v44, %v792_v51  ;;  %v795_v53 = vmul.f32 %v793_v50, %v793_v50  ;;  %v827_v21 = vmul.f32 %v826_v19, %v793_v50 }
 0x7fb   :  { %v4881_v49 = vpop.permute.xlu1 %996 }
 0x7fc   :  { %v797_v54 = vsel %vm73_vm0, %v795_v53, 0.0  ;;  %v796_v55 = vmul.f32 %v794_v52, %v794_v52  ;;  %v828_v22 = vmul.f32 %v826_v19, %v794_v52  ;;  %v1098_v51 = vsel %vm213_vm6, %v4881_v49, 0 }
 0x7fd   :  { %798 = vadd.xlane.f32.xlu0 %v797_v54 }
 0x7fe   :  { %v800_v56 = vsel %vm73_vm0, %v796_v55, 0.0 }
 0x801   :  { %801 = vadd.xlane.f32.xlu0 %v800_v56 }
 0x817   :  { %994 = vrot.lane.b32.xlu0 %v4864_v33, %s4532_s22 }
 0x88a   :  { %v799_v1 = vpop.xlane.xlu0 %798 }
 0x88b   :  { %v803_v2 = vmul.f32 0.032258064, %v799_v1 }
 0x88d   :  { %4453 = vrsqrt.f32 %v803_v2  ;;  %vm807_vm9 = vcmp.eq.f32.partialorder %v803_v2, inf  ;;  %v810_v7 = vand.u32 2147483648, %v803_v2  ;;  %vm809_vm10 = vcmp.eq.f32.partialorder %v803_v2, 0.0 }
 0x88e   :  { %v802_v3 = vpop.xlane.xlu0 %801 }
 0x88f   :  { %v804_v4 = vmul.f32 0.032258064, %v802_v3 }
 0x891   :  { %4455 = vrsqrt.f32 %v804_v4  ;;  %vm814_vm11 = vcmp.eq.f32.partialorder %v804_v4, inf  ;;  %v817_v13 = vand.u32 2147483648, %v804_v4  ;;  %vm816_vm12 = vcmp.eq.f32.partialorder %v804_v4, 0.0 }
 0x892   :  { %v4873_v37 = vpop.permute.xlu0 %994 }
 0x893   :  { %v1051_v38 = vsel %vm213_vm6, %v4873_v37, 0 }
 0x894   :  { %4182 = vmatpush3.bf16.xpose.msra.mxu1 %v1051_v38 }
 0x895   :  { %4193 = vmatprep.subr.bf16.mxu1 %v4529_v15 }
 0x897   :  { %v4454_v5 = vpop.eup %4453 }
 0x898   :  { %v806_v6 = vmul.f32 %v4454_v5, %v803_v2 }
 0x89a   :  { %v808_v8 = vsel %vm807_vm9, %v803_v2, %v806_v6 }
 0x89b   :  { %v4456_v9 = vpop.eup %4455  ;;  %v811_v10 = vsel %vm809_vm10, %v810_v7, %v808_v8 }
 0x89c   :  { %v819_v11 = vadd.f32 1e-06, %v811_v10  ;;  %v813_v12 = vmul.f32 %v4456_v9, %v804_v4 }
 0x89e   :  { %4457 = vrcp.f32 %v819_v11  ;;  %v815_v14 = vsel %vm814_vm11, %v804_v4, %v813_v12 }
 0x89f   :  { %v818_v16 = vsel %vm816_vm12, %v817_v13, %v815_v14 }
 0x8a0   :  { %v820_v17 = vadd.f32 1e-06, %v818_v16 }
 0x8a2   :  { %4459 = vrcp.f32 %v820_v17 }
 0x8a8   :  { %v4458_v20 = vpop.eup %4457 }
 0x8a9   :  { %v829_v23 = vmul.f32 %v4458_v20, %v827_v21 }
 0x8ab   :  { %v835_v27 = vadd.f32 %v834_v24, %v829_v23 }
 0x8ac   :  { %v4460_v25 = vpop.eup %4459 }
 0x8ad   :  { %v830_v26 = vmul.f32 %v4460_v25, %v828_v22 }
 0x8af   :  { %v836_v28 = vadd.f32 %v834_v24, %v830_v26 }
 0x8b1   :  { %v837_v29 = vpack.c.bf16 %v836_v28, %v835_v27 }
 0x8b3   :  { %4164 = vmatmul.mubr.msk.bf16.vlgmr.msra.gmra.mrb[20].mxu0 %vm73_vm0, %v837_v29 }
 0x8b4   :  { %4177 = vmatprep.mubr.msk.bf16.mxu0 %vm4530_vm1, %v4529_v15  ;;  %4176 = vmatpush3.bf16.xpose.msra.mxu0 %v1004_v34 }
 0x8b5   :  { %4187 = vmatprep.subr.bf16.mxu0 %v4529_v15 }
 0x986   :  { %v898_v42 = vpop.f32.mrb[20].mxu0 }
 0x987   :  { %v4165_v43 = vpop.f32.mrb[21].mxu0  ;;  %v899_v46 = vadd.f32 %v3682_v41, %v898_v42 }
 0x988   :  { %v901_v45 = vpop.f32.mrb[22].mxu0 }
 0x989   :  { %v902_v47 = vadd.f32 %v3682_v41, %v901_v45  ;;  %v4166_v48 = vpop.f32.mrb[23].mxu0 }
 0x98b   :  { %v905_v50 = vpack.c.bf16 %v902_v47, %v899_v46 }
 0x98d   :  { %989 = vrot.lane.b32.xlu0 %v905_v50, %s4531_s1  ;;  %987 = vrot.lane.b32.xlu1 %v905_v50, %s4532_s22  ;;  %s5655_s22 = sld [smem:[#allocation8_spill]] }
 0x98e   :  { %4178 = vmatmul.mubr.msk.bf16.vlgmr.msra.gmra.mrb[24].mxu0 %vm213_vm6, %v905_v50 }
 0x98f   :  { %4188 = vmatpush3.bf16.xpose.msra.mxu0 %v1098_v51  ;;  %4189 = vmatprep.mubr.msk.bf16.mxu0 %vm4530_vm1, %v4529_v15 }
 0x990   :  { %4199 = vmatprep.subr.bf16.mxu0 %v4529_v15 }
 0x991   :  { %998 = vrot.lane.b32.xlu1 %v4864_v33, %s4533_s24 }
 0x993   :  { %v979_v60 = vld [vmem:[%s5655_s22] sm:$0xff]  ;;  %v980_v62 = vld [vmem:[%s5655_s22 + $0x8] sm:$0xff] }
 0x995   :  { %991 = vrot.lane.b32.xlu1 %v905_v50, %s4533_s24 }
 0x9ff   :  { %v990_v52 = vpop.permute.xlu0 %989  ;;  %v988_v53 = vpop.permute.xlu1 %987 }
 0xa00   :  { %4184 = vmatmul.mubr.msk.bf16.vlgmr.msra.gmra.mrb[24].mxu1 %vm213_vm6, %v988_v53  ;;  %4190 = vmatmul.mubr.msk.bf16.vlgmr.msra.gmra.mrb[28].mxu0 %vm213_vm6, %v990_v52 }
 0xa01   :  { %4195 = vmatprep.mubr.msk.bf16.mxu1 %vm4530_vm1, %v4529_v15  ;;  %4201 = vmatprep.mubr.msk.bf16.mxu0 %vm4530_vm1, %v4529_v15 }
 0xa03   :  { %v4900_v54 = vpop.permute.xlu1 %998 }
 0xa04   :  { %v1145_v55 = vsel %vm213_vm6, %v4900_v54, 0 }
 0xa05   :  { %4194 = vmatpush3.bf16.xpose.msra.mxu1 %v1145_v55 }
 0xa06   :  { %4205 = vmatprep.subr.bf16.mxu1 %v4529_v15 }
 0xa07   :  { %v992_v56 = vpop.permute.xlu1 %991 }
 0xa0c   :  { %4196 = vmatmul.mubr.msk.bf16.vlgmr.msra.gmra.mrb[28].mxu1 %vm213_vm6, %v992_v56 }
 0xa0d   :  { %4207 = vmatprep.mubr.msk.bf16.mxu1 %vm4530_vm1, %v4529_v15 }
 0xa61   :  { %v1040_v61 = vpop.f32.mrb[24].mxu0 }
 0xa62   :  { %v1041_v63 = vadd.f32 %v1040_v61, %v979_v60  ;;  %v4179_v0 = vpop.f32.mrb[25].mxu0 }
 0xa63   :  { %v1043_v1 = vpop.f32.mrb[26].mxu0 }
 0xa64   :  { %v1044_v2 = vadd.f32 %v1043_v1, %v980_v62  ;;  %v4180_v3 = vpop.f32.mrb[27].mxu0  ;;  %v1188_v4 = vsel %vm408_vm7, %v1041_v63, -inf }
 0xa65   :  { %1189 = vmax.xlane.f32.xlu0 %v1188_v4 }
 0xa66   :  { %v1191_v5 = vsel %vm408_vm7, %v1044_v2, -inf }
 0xa67   :  { %1192 = vmax.xlane.f32.xlu1 %v1191_v5 }
 0xad3   :  { %v1087_v6 = vpop.f32.mrb[24].mxu1  ;;  %v1134_v7 = vpop.f32.mrb[28].mxu0 }
 0xad4   :  { %v1088_v8 = vadd.f32 %v1087_v6, %v979_v60  ;;  %v4185_v9 = vpop.f32.mrb[25].mxu1  ;;  %v4191_v10 = vpop.f32.mrb[29].mxu0  ;;  %v1135_v21 = vadd.f32 %v1134_v7, %v979_v60 }
 0xad5   :  { %v1090_v11 = vpop.f32.mrb[26].mxu1  ;;  %v1137_v12 = vpop.f32.mrb[30].mxu0 }
 0xad6   :  { %v1091_v13 = vadd.f32 %v1090_v11, %v980_v62  ;;  %v1138_v14 = vadd.f32 %v1137_v12, %v980_v62  ;;  %v4186_v16 = vpop.f32.mrb[27].mxu1  ;;  %v4192_v17 = vpop.f32.mrb[31].mxu0  ;;  %v1194_v19 = vsel %vm408_vm7, %v1088_v8, -inf  ;;  %v1200_v23 = vsel %vm408_vm7, %v1135_v21, -inf }
 0xad7   :  { %1195 = vmax.xlane.f32.xlu0 %v1194_v19 }
 0xad8   :  { %v1203_v20 = vsel %vm408_vm7, %v1138_v14, -inf  ;;  %v1197_v22 = vsel %vm408_vm7, %v1091_v13, -inf }
 0xad9   :  { %1204 = vmax.xlane.f32.xlu1 %v1203_v20 }
 0xadb   :  { %1198 = vmax.xlane.f32.xlu0 %v1197_v22 }
 0xadf   :  { %v1181_v24 = vpop.f32.mrb[28].mxu1  ;;  %1201 = vmax.xlane.f32.xlu0 %v1200_v23 }
 0xae0   :  { %v1182_v25 = vadd.f32 %v1181_v24, %v979_v60  ;;  %v4197_v26 = vpop.f32.mrb[29].mxu1 }
 0xae1   :  { %v1184_v27 = vpop.f32.mrb[30].mxu1 }
 0xae2   :  { %v1185_v28 = vadd.f32 %v1184_v27, %v980_v62  ;;  %v4198_v29 = vpop.f32.mrb[31].mxu1  ;;  %v1206_v36 = vsel %vm408_vm7, %v1182_v25, -inf }
 0xae3   :  { %1207 = vmax.xlane.f32.xlu0 %v1206_v36 }
 0xae4   :  { %v1209_v31 = vsel %vm408_vm7, %v1185_v28, -inf }
 0xae5   :  { %1210 = vmax.xlane.f32.xlu1 %v1209_v31 }
 0xaf2   :  { %v1190_v57 = vpop.xlane.xlu0 %1189 }
 0xaf3   :  { %v1212_v59 = vsub.f32 %v1041_v63, %v1190_v57 }
 0xaf4   :  { %v1193_v32 = vpop.xlane.xlu1 %1192 }
 0xaf5   :  { %v1220_v58 = vmul.f32 1.442695, %v1212_v59  ;;  %v1213_v39 = vsub.f32 %v1044_v2, %v1193_v32 }
 0xaf7   :  { %4461 = vpow2.f32 %v1220_v58  ;;  %v1222_v34 = vmul.f32 1.442695, %v1213_v39 }
 0xaf9   :  { %4463 = vpow2.f32 %v1222_v34 }
 0xb01   :  { %v4922_v38 = vpop.eup %4461 }
 0xb02   :  { %v1236_v41 = vsel %vm408_vm7, %v4922_v38, 0.0 }
 0xb03   :  { %v4926_v42 = vpop.eup %4463  ;;  %1237 = vadd.xlane.f32.xlu0 %v1236_v41 }
 0xb04   :  { %v1239_v43 = vsel %vm408_vm7, %v4926_v42, 0.0 }
 0xb05   :  { %1240 = vadd.xlane.f32.xlu1 %v1239_v43 }
 0xb64   :  { %v1196_v45 = vpop.xlane.xlu0 %1195 }
 0xb65   :  { %v1214_v46 = vsub.f32 %v1088_v8, %v1196_v45 }
 0xb66   :  { %v1205_v47 = vpop.xlane.xlu1 %1204 }
 0xb67   :  { %v1224_v48 = vmul.f32 1.442695, %v1214_v46  ;;  %v1217_v50 = vsub.f32 %v1138_v14, %v1205_v47 }
 0xb68   :  { %v1199_v51 = vpop.xlane.xlu0 %1198 }
 0xb69   :  { %4465 = vpow2.f32 %v1224_v48  ;;  %v1215_v52 = vsub.f32 %v1091_v13, %v1199_v51  ;;  %v1230_v53 = vmul.f32 1.442695, %v1217_v50 }
 0xb6b   :  { %v1226_v55 = vmul.f32 1.442695, %v1215_v52 }
 0xb6c   :  { %v1202_v56 = vpop.xlane.xlu0 %1201 }
 0xb6d   :  { %4467 = vpow2.f32 %v1226_v55  ;;  %v1216_v60 = vsub.f32 %v1135_v21, %v1202_v56 }
 0xb6e   :  { %4469 = vpow2.f32 %v1230_v53 }
 0xb6f   :  { %v1228_v61 = vmul.f32 1.442695, %v1216_v60  ;;  %v4283_v60 = vld [vmem:[%s5635_s14] sm:$0xff]  }
 0xb70   :  { %v1208_v62 = vpop.xlane.xlu0 %1207 }
 0xb71   :  { %4471 = vpow2.f32 %v1228_v61  ;;  %v1218_v63 = vsub.f32 %v1182_v25, %v1208_v62 }
 0xb72   :  { %v1211_v11 = vpop.xlane.xlu1 %1210 }
 0xb73   :  { %v4466_v0 = vpop.eup %4465  ;;  %v1232_v1 = vmul.f32 1.442695, %v1218_v63  ;;  %v1219_v12 = vsub.f32 %v1185_v28, %v1211_v11 }
 0xb74   :  { %v1242_v2 = vsel %vm408_vm7, %v4466_v0, 0.0 }
 0xb75   :  { %4473 = vpow2.f32 %v1232_v1  ;;  %1243 = vadd.xlane.f32.xlu0 %v1242_v2  ;;  %v1234_v13 = vmul.f32 1.442695, %v1219_v12 }
 0xb77   :  { %v4468_v3 = vpop.eup %4467  ;;  %4475 = vpow2.f32 %v1234_v13 }
 0xb78   :  { %v1245_v4 = vsel %vm408_vm7, %v4468_v3, 0.0  ;;  %v4470_v5 = vpop.eup %4469 }
 0xb79   :  { %1246 = vadd.xlane.f32.xlu1 %v1245_v4  ;;  %v1251_v8 = vsel %vm408_vm7, %v4470_v5, 0.0 }
 0xb7b   :  { %v4472_v6 = vpop.eup %4471 }
 0xb7c   :  { %v1248_v7 = vsel %vm408_vm7, %v4472_v6, 0.0 }
 0xb7d   :  { %1249 = vadd.xlane.f32.xlu0 %v1248_v7  ;;  %1252 = vadd.xlane.f32.xlu1 %v1251_v8 }
 0xb7f   :  { %v4934_v9 = vpop.eup %4473 }
 0xb80   :  { %v1254_v10 = vsel %vm408_vm7, %v4934_v9, 0.0 }
 0xb81   :  { %1255 = vadd.xlane.f32.xlu0 %v1254_v10  ;;  %v4476_v14 = vpop.eup %4475 }
 0xb82   :  { %v1257_v16 = vsel %vm408_vm7, %v4476_v14, 0.0 }
 0xb8e   :  { %1327 = vrot.lane.b32.xlu1 %v4873_v37, %s4534_s7 }
 0xb90   :  { %v1238_v17 = vpop.xlane.xlu0 %1237 }
 0xb92   :  { %1374 = vrot.lane.b32.xlu1 %v4881_v49, %s4534_s7  ;;  %v1241_v19 = vpop.xlane.xlu1 %1240 }
 0xb93   :  { %4477 = vrcp.f32 %v1241_v19 }
 0xb94   :  { %4479 = vrcp.f32 %v1238_v17 }
 0xb97   :  { %1280 = vrot.lane.b32.xlu0 %v4864_v33, %s4534_s7 }
 0xb9d   :  { %v4478_v21 = vpop.eup %4477 }
 0xb9e   :  { %v4480_v22 = vpop.eup %4479 }
 0xb9f   :  { %v1268_v27 = vmul.f32 %v4480_v22, %v4922_v38 }
 0xbb6   :  { %1258 = vadd.xlane.f32.xlu1 %v1257_v16 }
 0xbc7   :  { %1421 = vrot.lane.b32.xlu1 %v4900_v54, %s4534_s7  ;;  %v1269_v54 = vmul.f32 %v4478_v21, %v4926_v42 }
 0xbc9   :  { %v1276_v31 = vpack.c.bf16 %v1269_v54, %v1268_v27 }
 0xc02   :  { %v1244_v37 = vpop.xlane.xlu0 %1243 }
 0xc03   :  { %4481 = vrcp.f32 %v1244_v37 }
 0xc06   :  { %v1247_v49 = vpop.xlane.xlu1 %1246 }
 0xc07   :  { %4483 = vrcp.f32 %v1247_v49 }
 0xc0a   :  { %v1250_v33 = vpop.xlane.xlu0 %1249  ;;  %v1253_v20 = vpop.xlane.xlu1 %1252 }
 0xc0b   :  { %4485 = vrcp.f32 %v1250_v33 }
 0xc0c   :  { %4487 = vrcp.f32 %v1253_v20 }
 0xc0d   :  { %v4482_v25 = vpop.eup %4481 }
 0xc0e   :  { %v1256_v23 = vpop.xlane.xlu0 %1255  ;;  %v1328_v24 = vpop.permute.xlu1 %1327  ;;  %v1270_v28 = vmul.f32 %v4482_v25, %v4466_v0  ;;  %v3699_v25 = vld [vmem:[%s5636_s15] ss:$0 sm:$0xff] }
 0xc0f   :  { %4206 = vmatpush3.bf16.msra.mxu1 %v1328_v24  ;;  %4489 = vrcp.f32 %v1256_v23 }
 0xc10   :  { %4217 = vmatprep.subr.bf16.mxu1 %v4529_v15 }
 0xc11   :  { %v4484_v26 = vpop.eup %4483 }
 0xc12   :  { %v1271_v29 = vmul.f32 %v4484_v26, %v4468_v3  ;;  %v1281_v36 = vpop.permute.xlu0 %1280  ;;  %v1375_v58 = vpop.permute.xlu1 %1374 }
 0xc13   :  { %4200 = vmatpush3.bf16.msra.mxu0 %v1281_v36 }
 0xc14   :  { %v1277_v57 = vpack.c.bf16 %v1271_v29, %v1270_v28  ;;  %4211 = vmatprep.subr.bf16.mxu0 %v4529_v15 }
 0xc15   :  { %v4486_v59 = vpop.eup %4485 }
 0xc16   :  { %v4488_v32 = vpop.eup %4487  ;;  %4202 = vmatmul.mubr.msk.bf16.vlgmr.msra.gmra.mrb[32].mxu0 %vm408_vm7, %v1276_v31  ;;  %4208 = vmatmul.mubr.msk.bf16.vlgmr.msra.gmra.mrb[32].mxu1 %vm408_vm7, %v1277_v57  ;;  %v1272_v39 = vmul.f32 %v4486_v59, %v4472_v6 }
 0xc17   :  { %4212 = vmatpush3.bf16.msra.mxu0 %v1375_v58  ;;  %4213 = vmatprep.mubr.msk.bf16.mxu0 %vm4530_vm1, %v4529_v15  ;;  %v1273_v34 = vmul.f32 %v4488_v32, %v4470_v5  ;;  %v4284_v5 = vld [vmem:[%s5635_s14 + $0x8] sm:$0xff]  }
 0xc18   :  { %4219 = vmatprep.mubr.msk.bf16.mxu1 %vm4530_vm1, %v4529_v15  ;;  %4223 = vmatprep.subr.bf16.mxu0 %v4529_v15 }
 0xc19   :  { %v1278_v38 = vpack.c.bf16 %v1273_v34, %v1272_v39  ;;  %v4490_v43 = vpop.eup %4489 }
 0xc1a   :  { %v1274_v46 = vmul.f32 %v4490_v43, %v4934_v9 }
 0xc1e   :  { %4214 = vmatmul.mubr.msk.bf16.vlgmr.msra.gmra.mrb[36].mxu0 %vm408_vm7, %v1278_v38 }
 0xc1f   :  { %4227 = vmatprep.mubr.msk.bf16.mxu0 %vm4530_vm1, %v4529_v15  ;;  %4224 = vmatpush3.bf16.msra.mxu0 %v4283_v60  ;;  %v1640_v60 = vld [vmem:[%s5637_s16 + $0xc0] sm:$0xff] }
 0xc20   :  { %4225 = vmatprep.subr.bf16.mxu0 %v4529_v15 }
 0xc23   :  { %4226 = vmatpush3.bf16.msra.mxu0 %v4284_v5  ;;  %v1626_v5 = vld [vmem:[%s5637_s16 + $0x50] sm:$0xff] }
 0xc43   :  { %v1259_v41 = vpop.xlane.xlu1 %1258 }
 0xc44   :  { %4491 = vrcp.f32 %v1259_v41 }
 0xc47   :  { %v1422_v42 = vpop.permute.xlu1 %1421 }
 0xc48   :  { %4218 = vmatpush3.bf16.msra.mxu1 %v1422_v42 }
 0xc4e   :  { %v4492_v45 = vpop.eup %4491 }
 0xc4f   :  { %v1275_v47 = vmul.f32 %v4492_v45, %v4476_v14 }
 0xc51   :  { %v1279_v48 = vpack.c.bf16 %v1275_v47, %v1274_v46  ;;  %v1616_v46 = vld [vmem:[%s5637_s16] sm:$0xff] }
 0xc52   :  { %v1624_v47 = vld [vmem:[%s5637_s16 + $0x40] sm:$0xff] }
 0xc53   :  { %4220 = vmatmul.mubr.msk.bf16.vlgmr.msra.gmra.mrb[36].mxu1 %vm408_vm7, %v1279_v48  ;;  %v1617_v48 = vld [vmem:[%s5637_s16 + $0x8] sm:$0xff] }
 0xce9   :  { %v1320_v50 = vpop.f32.mrb[32].mxu0  ;;  %v1367_v51 = vpop.f32.mrb[32].mxu1 }
 0xcea   :  { %v4203_v52 = vpop.f32.mrb[33].mxu0  ;;  %v4209_v53 = vpop.f32.mrb[33].mxu1 }
 0xceb   :  { %v1323_v55 = vpop.f32.mrb[34].mxu0  ;;  %v1370_v56 = vpop.f32.mrb[34].mxu1  ;;  %v3703_v52 = vcombine.low %v1616_v46, %v1624_v47 }
 0xcec   :  { %v4259_v61 = vpack.i.bf16 %v1370_v56, %v1367_v51  ;;  %v4204_v62 = vpop.f32.mrb[35].mxu0  ;;  %v4210_v63 = vpop.f32.mrb[35].mxu1  ;;  %v1625_v51 = vld [vmem:[%s5637_s16 + $0x48] sm:$0xff]  ;;  %v1632_v56 = vld [vmem:[%s5637_s16 + $0x80] sm:$0xff] }
 0xced   :  { %v3705_v53 = vcombine.low %v1617_v48, %v1625_v51  ;;  %v3719_v62 = vcombine.low %v1632_v56, %v1640_v60  ;;  %v3720_v63 = vcombine.high %v1632_v56, %v1640_v60 }
 0xcee   :  { %4260 = vrot.lane.b32.xlu0 %v4259_v61, %s4536_s21  ;;  %v1633_v61 = vld [vmem:[%s5637_s16 + $0x88] sm:$0xff] }
 0xcf1   :  { %v1414_v0 = vpop.f32.mrb[36].mxu0 }
 0xcf2   :  { %v4215_v1 = vpop.f32.mrb[37].mxu0 }
 0xcf3   :  { %v1417_v2 = vpop.f32.mrb[38].mxu0  ;;  %v4539_v1 = vmov 0  }
 0xcf4   :  { %v4264_v3 = vpack.i.bf16 %v1417_v2, %v1414_v0  ;;  %v4216_v4 = vpop.f32.mrb[39].mxu0  ;;  %v1641_v0 = vld [vmem:[%s5637_s16 + $0xc8] sm:$0xff]  ;;  %1927 = vmatprep.mubr.bf16.mxu1 %v4539_v1 }
 0xcf5   :  { %v3721_v2 = vcombine.low %v1633_v61, %v1641_v0  ;;  %v1618_v4 = vld [vmem:[%s5637_s16 + $0x10] sm:$0xff] }
 0xcf6   :  { %4265 = vrot.lane.b32.xlu1 %v4264_v3, %s4537_s2  ;;  %v3722_v3 = vcombine.high %v1633_v61, %v1641_v0  ;;  %v1636_v61 = vld [vmem:[%s5637_s16 + $0xa0] sm:$0xff]  ;;  %v1645_v0 = vld [vmem:[%s5637_s16 + $0xe8] sm:$0xff] }
 0xd26   :  { %v1461_v6 = vpop.f32.mrb[36].mxu1 }
 0xd27   :  { %v4221_v7 = vpop.f32.mrb[37].mxu1 }
 0xd28   :  { %v1464_v8 = vpop.f32.mrb[38].mxu1  ;;  %v3708_v7 = vcombine.high %v1618_v4, %v1626_v5 }
 0xd29   :  { %v4269_v9 = vpack.i.bf16 %v1464_v8, %v1461_v6  ;;  %v4222_v10 = vpop.f32.mrb[39].mxu1  ;;  %v1619_v6 = vld [vmem:[%s5637_s16 + $0x18] sm:$0xff] }
 0xd2a   :  { %v1627_v8 = vld [vmem:[%s5637_s16 + $0x58] sm:$0xff] }
 0xd2b   :  { %4270 = vrot.lane.b32.xlu0 %v4269_v9, %s4538_s8  ;;  %v3707_v9 = vcombine.low %v1618_v4, %v1626_v5  ;;  %v3709_v10 = vcombine.low %v1619_v6, %v1627_v8 }
 0xd60   :  { %v4261_v15 = vpop.permute.xlu0 %4260 }
 0xd61   :  { %v4263_v12 = vunpack.i.h.bf16 %v4261_v15  ;;  %v4262_v13 = vunpack.i.l.bf16 %v4261_v15  ;;  %v3710_v15 = vcombine.high %v1619_v6, %v1627_v8  ;;  %v1622_v6 = vld [vmem:[%s5637_s16 + $0x30] sm:$0xff]  ;;  %v1623_v8 = vld [vmem:[%s5637_s16 + $0x38] sm:$0xff] }
 0xd63   :  { %v1492_v19 = vsel %vm213_vm6, %v1320_v50, %v4262_v13  ;;  %v1493_v37 = vsel %vm213_vm6, %v1323_v55, %v4263_v12  ;;  %v3704_v50 = vcombine.high %v1616_v46, %v1624_v47  ;;  %v3706_v55 = vcombine.high %v1617_v48, %v1625_v51  ;;  %v1620_v48 = vld [vmem:[%s5637_s16 + $0x20] sm:$0xff]  ;;  %v1621_v51 = vld [vmem:[%s5637_s16 + $0x28] sm:$0xff] }
 0xd65   :  { %1895 = vmatprep.subr.bf16.mxu1 %v3704_v50  ;;  %1938 = vmatprep.subr.bf16.mxu0 %v3706_v55  ;;  %v1628_v50 = vld [vmem:[%s5637_s16 + $0x60] sm:$0xff] }
 0xd66   :  { %1896 = vmatpush1.bf16.msra.mxu1 %v3703_v52  ;;  %v1629_v52 = vld [vmem:[%s5637_s16 + $0x68] sm:$0xff]  ;;  %v3712_v56 = vcombine.high %v1620_v48, %v1628_v50 }
 0xd67   :  { %1897 = vmatprep.subr.bf16.mxu1 %v3720_v63  ;;  %v3714_v60 = vcombine.high %v1621_v51, %v1629_v52  ;;  %v1637_v63 = vld [vmem:[%s5637_s16 + $0xa8] sm:$0xff] }
 0xd68   :  { %v4266_v11 = vpop.permute.xlu1 %4265  ;;  %v3730_v5 = vcombine.high %v1637_v63, %v1645_v0 }
 0xd69   :  { %v4268_v14 = vunpack.i.h.bf16 %v4266_v11  ;;  %v4267_v16 = vunpack.i.l.bf16 %v4266_v11 }
 0xd6a   :  { %1898 = vmatpush1.bf16.msra.mxu1 %v3719_v62  ;;  %v1644_v62 = vld [vmem:[%s5637_s16 + $0xe0] sm:$0xff] }
 0xd6b   :  { %v1495_v20 = vsel %vm408_vm7, %v1493_v37, %v4268_v14  ;;  %v1494_v21 = vsel %vm408_vm7, %v1492_v19, %v4267_v16  ;;  %1981 = vmatprep.subr.bf16.mxu1 %v3708_v7  ;;  %v3728_v4 = vcombine.high %v1636_v61, %v1644_v62  ;;  %v1630_v7 = vld [vmem:[%s5637_s16 + $0x70] sm:$0xff] }
 0xd9d   :  { %v4271_v17 = vpop.permute.xlu0 %4270 }
 0xd9e   :  { %v4273_v49 = vunpack.i.h.bf16 %v4271_v17  ;;  %v4272_v33 = vunpack.i.l.bf16 %v4271_v17 }
 0xda0   :  { %v1496_v22 = vsel %vm717_vm8, %v1494_v21, %v4272_v33  ;;  %v1497_v23 = vsel %vm717_vm8, %v1495_v20, %v4273_v49 }
 0xda1   :  { %v1498_v24 = vpack.c.bf16 %v1497_v23, %v1496_v22 }
 0xda3   :  { %4228 = vmatmul.mubr.msk.bf16.vlgmr.msra.gmra.mrb[40].mxu0 %vm73_vm0, %v1498_v24 }
 0xda4   :  { %1939 = vmatpush1.bf16.msra.mxu0 %v3705_v53  ;;  %1970 = vmatprep.mubr.bf16.mxu0 %v4539_v1 }
 0xda5   :  { %1940 = vmatprep.subr.bf16.mxu0 %v3722_v3  ;;  %v3713_v3 = vcombine.low %v1621_v51, %v1629_v52  ;;  %v4311_v51 = vld [vmem:[%s5639_s18 + $0x30] sm:$0xff]  }
 0xda6   :  { %v4312_v52 = vld [vmem:[%s5639_s18 + $0xb0] sm:$0xff]  }
 0xda8   :  { %1941 = vmatpush1.bf16.msra.mxu0 %v3721_v2  ;;  %v3711_v2 = vcombine.low %v1620_v48, %v1628_v50  ;;  %v4309_v48 = vld [vmem:[%s5639_s18 + $0x70] sm:$0xff]  }
 0xda9   :  { %2024 = vmatprep.subr.bf16.mxu0 %v3710_v15  ;;  %v3729_v15 = vcombine.low %v1637_v63, %v1645_v0  ;;  %v4310_v50 = vld [vmem:[%s5639_s18 + $0xf0] sm:$0xff]   ;;  %v1678_v63 = vsub.s32 6, %v4671_v30  ;;  %v5246_v0 = vld [vmem:[%s5638_s17 + $0x8] sm:$0xff] }
 0xe76   :  { %v1554_v54 = vpop.f32.mrb[40].mxu0 }
 0xe77   :  { %v1555_v26 = vadd.f32 %v3699_v25, %v1554_v54  ;;  %v4229_v27 = vpop.f32.mrb[41].mxu0  ;;  %v5044_v54 = vsub.s32 2, %v4671_v30 }
 0xe78   :  { %v1557_v28 = vpop.f32.mrb[42].mxu0 }
 0xe79   :  { %v4984_v29 = vadd.f32 %v1555_v26, %v4814_v40  ;;  %v1558_v36 = vadd.f32 %v3699_v25, %v1557_v28  ;;  %v4230_v31 = vpop.f32.mrb[43].mxu0  ;;  %v4503_v26 = vld [vmem:[%s5652_s4] sm:$0x7] }
 0xe7a   :  { %v1604_v27 = vrot.slane %v4503_v26, %v5044_v54  ;;  %v4504_v31 = vld [vmem:[%s5626_s5] sm:$0x7]  ;;  %v4289_v26 = vld [vmem:[%s5639_s18 + $0x48] sm:$0xff]  }
 0xe7b   :  { %v4987_v57 = vadd.f32 %v1558_v36, %v4819_v44  ;;  %v1563_v59 = vsel %vm73_vm0, %v4984_v29, 0.0 }
 0xe7c   :  { %1564 = vadd.xlane.f32.xlu1 %v1563_v59  ;;  %v1612_v59 = vrot.slane %v4504_v31, %v5044_v54  ;;  %v4294_v31 = vld [vmem:[%s5639_s18 + $0xd0] sm:$0xff]  }
 0xe7d   :  { %v1566_v32 = vsel %vm73_vm0, %v4987_v57, 0.0 }
 0xe7e   :  { %1567 = vadd.xlane.f32.xlu0 %v1566_v32 }
 0xf09   :  { %v1565_v58 = vpop.xlane.xlu1 %1564 }
 0xf0a   :  { %v1569_v39 = vmul.f32 0.03125, %v1565_v58 }
 0xf0b   :  { %v1568_v34 = vpop.xlane.xlu0 %1567 }
 0xf0c   :  { %v4994_v38 = vsub.f32 %v4984_v29, %v1569_v39  ;;  %v1570_v40 = vmul.f32 0.03125, %v1568_v34 }
 0xf0e   :  { %v4997_v41 = vsub.f32 %v4987_v57, %v1570_v40  ;;  %v1573_v44 = vmul.f32 %v4994_v38, %v4994_v38  ;;  %v1605_v36 = vmul.f32 %v1604_v27, %v4994_v38  ;;  %v1634_v40 = vld [vmem:[%s5637_s16 + $0x90] sm:$0xff]  ;;  %v1635_v38 = vld [vmem:[%s5637_s16 + $0x98] sm:$0xff] }
 0xf10   :  { %v1575_v42 = vsel %vm73_vm0, %v1573_v44, 0.0  ;;  %v1574_v43 = vmul.f32 %v4997_v41, %v4997_v41  ;;  %v1606_v32 = vmul.f32 %v1604_v27, %v4997_v41  ;;  %v1642_v44 = vld [vmem:[%s5637_s16 + $0xd0] sm:$0xff]  ;;  %v4291_v27 = vld [vmem:[%s5639_s18 + $0x8] sm:$0xff]  }
 0xf11   :  { %1576 = vadd.xlane.f32.xlu0 %v1575_v42  ;;  %v1643_v42 = vld [vmem:[%s5637_s16 + $0xd8] sm:$0xff]  ;;  %v3724_v46 = vcombine.high %v1634_v40, %v1642_v44  ;;  %v3723_v53 = vcombine.low %v1634_v40, %v1642_v44  ;;  %v4301_v44 = vld [vmem:[%s5639_s18 + $0x60] sm:$0xff]  }
 0xf12   :  { %v1578_v45 = vsel %vm73_vm0, %v1574_v43, 0.0  ;;  %v3726_v47 = vcombine.high %v1635_v38, %v1643_v42  ;;  %v3725_v55 = vcombine.low %v1635_v38, %v1643_v42  ;;  %v4300_v40 = vld [vmem:[%s5639_s18 + $0x98] sm:$0xff]   ;;  %v4302_v38 = vld [vmem:[%s5639_s18 + $0xe0] sm:$0xff]  }
 0xf13   :  { %v4303_v42 = vld [vmem:[%s5639_s18 + $0x20] sm:$0xff]  }
 0xf15   :  { %1579 = vadd.xlane.f32.xlu0 %v1578_v45 }
 0xf9e   :  { %v1577_v11 = vpop.xlane.xlu0 %1576 }
 0xf9f   :  { %v1581_v12 = vmul.f32 0.032258064, %v1577_v11  ;;  %v3716_v11 = vcombine.high %v1622_v6, %v1630_v7 }
 0xfa1   :  { %4493 = vrsqrt.f32 %v1581_v12  ;;  %vm1585_vm13 = vcmp.eq.f32.partialorder %v1581_v12, inf  ;;  %v1588_v19 = vand.u32 2147483648, %v1581_v12  ;;  %vm1587_vm14 = vcmp.eq.f32.partialorder %v1581_v12, 0.0 }
 0xfa2   :  { %v1580_v13 = vpop.xlane.xlu0 %1579 }
 0xfa3   :  { %v1582_v14 = vmul.f32 0.032258064, %v1580_v13  ;;  %v1638_v13 = vld [vmem:[%s5637_s16 + $0xb0] sm:$0xff] }
 0xfa5   :  { %4495 = vrsqrt.f32 %v1582_v14  ;;  %vm1592_vm15 = vcmp.eq.f32.partialorder %v1582_v14, inf  ;;  %v1595_v22 = vand.u32 2147483648, %v1582_v14  ;;  %vm1594_vm1 = vcmp.eq.f32.partialorder %v1582_v14, 0.0 }
 0xfab   :  { %v4494_v16 = vpop.eup %4493 }
 0xfac   :  { %v1584_v17 = vmul.f32 %v4494_v16, %v1581_v12  ;;  %v1639_v16 = vld [vmem:[%s5637_s16 + $0xb8] sm:$0xff] }
 0xfae   :  { %v1586_v37 = vsel %vm1585_vm13, %v1581_v12, %v1584_v17  ;;  %v1647_v17 = vld [vmem:[%s5637_s16 + $0xf8] sm:$0xff] }
 0xfaf   :  { %v4496_v49 = vpop.eup %4495  ;;  %v1589_v33 = vsel %vm1587_vm14, %v1588_v19, %v1586_v37  ;;  %v3715_v19 = vcombine.low %v1622_v6, %v1630_v7 }
 0xfb0   :  { %v1597_v20 = vadd.f32 1e-06, %v1589_v33  ;;  %v1591_v21 = vmul.f32 %v4496_v49, %v1582_v14  ;;  %v3734_v33 = vcombine.high %v1639_v16, %v1647_v17 }
 0xfb2   :  { %4497 = vrcp.f32 %v1597_v20  ;;  %v1593_v23 = vsel %vm1592_vm15, %v1582_v14, %v1591_v21  ;;  %v1646_v14 = vld [vmem:[%s5637_s16 + $0xf0] sm:$0xff]  ;;  %v3733_v21 = vcombine.low %v1639_v16, %v1647_v17 }
 0xfb3   :  { %v1596_v24 = vsel %vm1594_vm1, %v1595_v22, %v1593_v23  ;;  %v3732_v49 = vcombine.high %v1638_v13, %v1646_v14  ;;  %v3731_v20 = vcombine.low %v1638_v13, %v1646_v14  ;;  %v4285_v22 = vld [vmem:[%s5639_s18 + $0x40] sm:$0xff]  }
 0xfb4   :  { %v1598_v25 = vadd.f32 1e-06, %v1596_v24  ;;  %v4286_v23 = vld [vmem:[%s5639_s18 + $0xc0] sm:$0xff]  }
 0xfb5   :  { %v4287_v24 = vld [vmem:[%s5639_s18] sm:$0xff]  }
 0xfb6   :  { %4499 = vrcp.f32 %v1598_v25  ;;  %v4288_v25 = vld [vmem:[%s5639_s18 + $0x80] sm:$0xff]  }
 0xfbc   :  { %v4498_v28 = vpop.eup %4497 }
 0xfbd   :  { %v1607_v58 = vmul.f32 %v4498_v28, %v1605_v36  ;;  %v4292_v28 = vld [vmem:[%s5639_s18 + $0x88] sm:$0xff]   ;;  %v4293_v36 = vld [vmem:[%s5639_s18 + $0x50] sm:$0xff]  }
 0xfbf   :  { %v1613_v41 = vadd.f32 %v1612_v59, %v1607_v58  ;;  %v4297_v58 = vld [vmem:[%s5639_s18 + $0x58] sm:$0xff]  }
 0xfc0   :  { %v4500_v39 = vpop.eup %4499 }
 0xfc1   :  { %v1608_v34 = vmul.f32 %v4500_v39, %v1606_v32  ;;  %v4296_v32 = vld [vmem:[%s5639_s18 + $0x90] sm:$0xff]   ;;  %v4298_v39 = vld [vmem:[%s5639_s18 + $0xd8] sm:$0xff]  }
 0xfc3   :  { %v1614_v43 = vadd.f32 %v1612_v59, %v1608_v34  ;;  %v4295_v59 = vld [vmem:[%s5639_s18 + $0x10] sm:$0xff]   ;;  %v4299_v34 = vld [vmem:[%s5639_s18 + $0x18] sm:$0xff]  }
 0xfc5   :  { %v5068_v45 = vpack.c.bf16 %v1614_v43, %v1613_v41  ;;  %v4304_v41 = vld [vmem:[%s5639_s18 + $0xa0] sm:$0xff]   ;;  %v4305_v43 = vld [vmem:[%s5639_s18 + $0x68] sm:$0xff]  }
 0xfc7   :  { %3735 = vmatmul.mubr.msk.bf16.vlgmr.msra.gmra.mrb[40].mxu1 %vm73_vm0, %v5068_v45  ;;  %3736 = vmatmul.mubr.msk.bf16.vlgmr.msra.gmra.mrb[44].mxu0 %vm73_vm0, %v5068_v45 }
 0xfc8   :  { %1982 = vmatpush1.bf16.msra.mxu1 %v3707_v9  ;;  %2025 = vmatpush1.bf16.msra.mxu0 %v3709_v10  ;;  %v1631_v9 = vld [vmem:[%s5637_s16 + $0x78] sm:$0xff]  ;;  %v3727_v10 = vcombine.low %v1636_v61, %v1644_v62  ;;  %v4317_v61 = vld [vmem:[%s5639_s18 + $0x140] sm:$0xff]  }
 0xfc9   :  { %1983 = vmatprep.subr.bf16.mxu1 %v3724_v46  ;;  %2026 = vmatprep.subr.bf16.mxu0 %v3726_v47  ;;  %v3718_v12 = vcombine.high %v1623_v8, %v1631_v9  ;;  %v3717_v37 = vcombine.low %v1623_v8, %v1631_v9  ;;  %v4307_v46 = vld [vmem:[%s5639_s18 + $0x28] sm:$0xff]   ;;  %v4318_v62 = vld [vmem:[%s5639_s18 + $0x1c0] sm:$0xff]   ;;  %v1670_v9 = vsub.s32 4, %v4671_v30 }
 0xfca   :  { %2013 = vmatprep.mubr.bf16.mxu1 %v4539_v1  ;;  %2056 = vmatprep.mubr.bf16.mxu0 %v4539_v1  ;;  %v4308_v47 = vld [vmem:[%s5639_s18 + $0xa8] sm:$0xff]  }
 0xfcc   :  { %1984 = vmatpush1.bf16.msra.mxu1 %v3723_v53  ;;  %2027 = vmatpush1.bf16.msra.mxu0 %v3725_v55  ;;  %v4313_v53 = vld [vmem:[%s5639_s18 + $0x78] sm:$0xff]  }
 0xfcd   :  { %2067 = vmatprep.subr.bf16.mxu1 %v3712_v56  ;;  %2110 = vmatprep.subr.bf16.mxu0 %v3714_v60  ;;  %v4314_v55 = vld [vmem:[%s5639_s18 + $0xf8] sm:$0xff]  }
 0xfce   :  { %v4315_v56 = vld [vmem:[%s5639_s18 + $0x38] sm:$0xff]  }
 0xfcf   :  { %3737 = vmatmul.mubr.msk.bf16.vlgmr.msra.gmra.mrb[44].mxu1 %vm73_vm0, %v5068_v45  ;;  %3738 = vmatmul.mubr.msk.bf16.vlgmr.msra.gmra.mrb[48].mxu0 %vm73_vm0, %v5068_v45  ;;  %v4316_v60 = vld [vmem:[%s5639_s18 + $0xb8] sm:$0xff]  }
 0xfd0   :  { %2068 = vmatpush1.bf16.msra.mxu1 %v3711_v2  ;;  %2111 = vmatpush1.bf16.msra.mxu0 %v3713_v3  ;;  %v5249_v2 = vrot.slane %v5246_v0, %v1678_v63  ;;  %v1648_v3 = vld [vmem:[%s5638_s17] sm:$0xff] }
 0xfd1   :  { %2069 = vmatprep.subr.bf16.mxu1 %v3728_v4  ;;  %2112 = vmatprep.subr.bf16.mxu0 %v3730_v5  ;;  %v1666_v4 = vsub.s32 3, %v4671_v30  ;;  %v1655_v5 = vrot.slane %v1648_v3, %v4674_v35  ;;  %v1663_v6 = vrot.slane %v1648_v3, %v5044_v54  ;;  %v1659_v7 = vrot.slane %v1648_v3, %v4852_v18 }
 0xfd2   :  { %2099 = vmatprep.mubr.bf16.mxu1 %v4539_v1  ;;  %2142 = vmatprep.mubr.bf16.mxu0 %v4539_v1 }
 0xfd3   :  { %v1667_v8 = vrot.slane %v1648_v3, %v1666_v4 }
 0xfd4   :  { %2070 = vmatpush1.bf16.msra.mxu1 %v3727_v10  ;;  %2113 = vmatpush1.bf16.msra.mxu0 %v3729_v15 }
 0xfd5   :  { %2153 = vmatprep.subr.bf16.mxu1 %v3716_v11  ;;  %2196 = vmatprep.subr.bf16.mxu0 %v3718_v12  ;;  %v1674_v11 = vsub.s32 5, %v4671_v30  ;;  %v1682_v12 = vsub.s32 7, %v4671_v30 }
 0xfd7   :  { %3739 = vmatmul.mubr.msk.bf16.vlgmr.msra.gmra.mrb[48].mxu1 %vm73_vm0, %v5068_v45  ;;  %3740 = vmatmul.mubr.msk.bf16.vlgmr.msra.gmra.mrb[52].mxu0 %vm73_vm0, %v5068_v45 }
 0xfd8   :  { %2154 = vmatpush1.bf16.msra.mxu1 %v3715_v19  ;;  %2197 = vmatpush1.bf16.msra.mxu0 %v3717_v37 }
 0xfd9   :  { %2155 = vmatprep.subr.bf16.mxu1 %v3732_v49  ;;  %2198 = vmatprep.subr.bf16.mxu0 %v3734_v33 }
 0xfda   :  { %2185 = vmatprep.mubr.bf16.mxu1 %v4539_v1  ;;  %2228 = vmatprep.mubr.bf16.mxu0 %v4539_v1  ;;  %v4290_v1 = vld [vmem:[%s5639_s18 + $0xc8] sm:$0xff]  }
 0xfdc   :  { %2156 = vmatpush1.bf16.msra.mxu1 %v3731_v20  ;;  %2199 = vmatpush1.bf16.msra.mxu0 %v3733_v21 }
 0xfdd   :  { %3919 = vmatprep.subr.bf16.mxu1 %v4285_v22  ;;  %3941 = vmatprep.subr.bf16.mxu0 %v4286_v23 }
 0xfdf   :  { %3741 = vmatmul.mubr.msk.bf16.vlgmr.msra.gmra.mrb[52].mxu1 %vm73_vm0, %v5068_v45  ;;  %3742 = vmatmul.mubr.msk.bf16.vlgmr.msra.gmra.mrb[56].mxu0 %vm73_vm0, %v5068_v45  ;;  %v4306_v45 = vld [vmem:[%s5639_s18 + $0xe8] sm:$0xff]  }
 0xfe0   :  { %3920 = vmatpush3.bf16.msra.mxu1 %v4287_v24  ;;  %3942 = vmatpush3.bf16.msra.mxu0 %v4288_v25  ;;  %v1671_v24 = vrot.slane %v1648_v3, %v1670_v9  ;;  %v1679_v25 = vrot.slane %v1648_v3, %v1678_v63 }
 0xfe1   :  { %3921 = vmatprep.subr.bf16.mxu1 %v4289_v26  ;;  %3943 = vmatprep.subr.bf16.mxu0 %v4290_v1 }
 0xfe4   :  { %3922 = vmatpush3.bf16.msra.mxu1 %v4291_v27  ;;  %3944 = vmatpush3.bf16.msra.mxu0 %v4292_v28  ;;  %v1675_v27 = vrot.slane %v1648_v3, %v1674_v11  ;;  %v1683_v28 = vrot.slane %v1648_v3, %v1682_v12  ;;  %v1695_v3 = vrot.slane %v5246_v0, %v5044_v54  ;;  %v4324_v54 = vld [vmem:[%s5639_s18 + $0x188] sm:$0xff]  }
 0xfe5   :  { %3923 = vmatprep.subr.bf16.mxu1 %v4293_v36  ;;  %3945 = vmatprep.subr.bf16.mxu0 %v4294_v31 }
 0xfe8   :  { %3924 = vmatpush3.bf16.msra.mxu1 %v4295_v59  ;;  %3946 = vmatpush3.bf16.msra.mxu0 %v4296_v32 }
 0xfe9   :  { %3925 = vmatprep.subr.bf16.mxu1 %v4297_v58  ;;  %3947 = vmatprep.subr.bf16.mxu0 %v4298_v39 }
 0xfec   :  { %3926 = vmatpush3.bf16.msra.mxu1 %v4299_v34  ;;  %3948 = vmatpush3.bf16.msra.mxu0 %v4300_v40 }
 0xfed   :  { %3927 = vmatprep.subr.bf16.mxu1 %v4301_v44  ;;  %3949 = vmatprep.subr.bf16.mxu0 %v4302_v38 }
 0xff0   :  { %3928 = vmatpush3.bf16.msra.mxu1 %v4303_v42  ;;  %3950 = vmatpush3.bf16.msra.mxu0 %v4304_v41 }
 0xff1   :  { %3929 = vmatprep.subr.bf16.mxu1 %v4305_v43  ;;  %3951 = vmatprep.subr.bf16.mxu0 %v4306_v45 }
 0xff4   :  { %3930 = vmatpush3.bf16.msra.mxu1 %v4307_v46  ;;  %3952 = vmatpush3.bf16.msra.mxu0 %v4308_v47  ;;  %v4319_v46 = vld [vmem:[%s5639_s18 + $0x100] sm:$0xff]  }
 0xff5   :  { %3931 = vmatprep.subr.bf16.mxu1 %v4309_v48  ;;  %3953 = vmatprep.subr.bf16.mxu0 %v4310_v50  ;;  %v4320_v47 = vld [vmem:[%s5639_s18 + $0x180] sm:$0xff]  }
 0xff8   :  { %3932 = vmatpush3.bf16.msra.mxu1 %v4311_v51  ;;  %3954 = vmatpush3.bf16.msra.mxu0 %v4312_v52 }
 0xff9   :  { %3933 = vmatprep.subr.bf16.mxu1 %v4313_v53  ;;  %3955 = vmatprep.subr.bf16.mxu0 %v4314_v55  ;;  %v4321_v53 = vld [vmem:[%s5639_s18 + $0x148] sm:$0xff]  }
 0xffa   :  { %v4322_v55 = vld [vmem:[%s5639_s18 + $0x1c8] sm:$0xff]  }
 0xffc   :  { %3934 = vmatpush3.bf16.msra.mxu1 %v4315_v56  ;;  %3956 = vmatpush3.bf16.msra.mxu0 %v4316_v60  ;;  %v1687_v56 = vrot.slane %v5246_v0, %v4674_v35 }
 0xffd   :  { %3963 = vmatprep.subr.bf16.mxu1 %v4317_v61  ;;  %3985 = vmatprep.subr.bf16.mxu0 %v4318_v62 }
0x109a   :  { %v1929_v10 = vpop.f32.mrb[40].mxu1  ;;  %v1972_v15 = vpop.f32.mrb[44].mxu0 }
0x109b   :  { %v1930_v13 = vadd.f32 %v1929_v10, %v1655_v5  ;;  %v1973_v14 = vadd.f32 %v1972_v15, %v1663_v6  ;;  %v1931_v16 = vpop.f32.mrb[41].mxu1  ;;  %v1974_v17 = vpop.f32.mrb[45].mxu0  ;;  %v1691_v10 = vrot.slane %v5246_v0, %v4852_v18 }
0x109c   :  { %v1932_v19 = vadd.f32 %v1931_v16, %v1659_v7  ;;  %v1975_v37 = vadd.f32 %v1974_v17, %v1667_v8  ;;  %v1933_v49 = vpop.f32.mrb[42].mxu1  ;;  %v1976_v33 = vpop.f32.mrb[46].mxu0 }
0x109d   :  { %v1934_v20 = vadd.f32 %v1933_v49, %v1655_v5  ;;  %v1977_v21 = vadd.f32 %v1976_v33, %v1663_v6  ;;  %v1935_v22 = vpop.f32.mrb[43].mxu1  ;;  %v1978_v23 = vpop.f32.mrb[47].mxu0  ;;  %v2239_v36 = vmax.f32 %v1930_v13, 0.0  ;;  %v2241_v31 = vmax.f32 %v1973_v14, 0.0  ;;  %v4323_v13 = vld [vmem:[%s5639_s18 + $0x108] sm:$0xff]   ;;  %v4326_v49 = vld [vmem:[%s5639_s18 + $0x1d0] sm:$0xff]  }
0x109e   :  { %v1936_v26 = vadd.f32 %v1935_v22, %v1659_v7  ;;  %v1979_v1 = vadd.f32 %v1978_v23, %v1667_v8  ;;  %v2240_v58 = vmax.f32 %v1932_v19, 0.0  ;;  %v2242_v39 = vmax.f32 %v1975_v37, 0.0  ;;  %v4325_v37 = vld [vmem:[%s5639_s18 + $0x150] sm:$0xff]  }
0x109f   :  { %v2255_v59 = vmax.f32 %v1934_v20, 0.0  ;;  %v2257_v32 = vmax.f32 %v1977_v21, 0.0  ;;  %v1699_v14 = vrot.slane %v5246_v0, %v1666_v4 }
0x10a0   :  { %v2256_v34 = vmax.f32 %v1936_v26, 0.0  ;;  %v2258_v40 = vmax.f32 %v1979_v1, 0.0 }
0x10a1   :  { %v2271_v44 = vpack.c.bf16 %v2255_v59, %v2239_v36  ;;  %v2273_v38 = vpack.c.bf16 %v2257_v32, %v2241_v31 }
0x10a2   :  { %v2272_v42 = vpack.c.bf16 %v2256_v34, %v2240_v58  ;;  %v2274_v41 = vpack.c.bf16 %v2258_v40, %v2242_v39  ;;  %v2015_v43 = vpop.f32.mrb[44].mxu1  ;;  %v2058_v45 = vpop.f32.mrb[48].mxu0  ;;  %v4329_v58 = vld [vmem:[%s5639_s18 + $0x158] sm:$0xff]  }
0x10a3   :  { %v2016_v48 = vadd.f32 %v2015_v43, %v1671_v24  ;;  %v2059_v50 = vadd.f32 %v2058_v45, %v1679_v25  ;;  %v2017_v51 = vpop.f32.mrb[45].mxu1  ;;  %v2060_v52 = vpop.f32.mrb[49].mxu0  ;;  %v4330_v39 = vld [vmem:[%s5639_s18 + $0x1d8] sm:$0xff]  }
0x10a4   :  { %v2018_v60 = vadd.f32 %v2017_v51, %v1675_v27  ;;  %v2061_v61 = vadd.f32 %v2060_v52, %v1683_v28  ;;  %v2019_v62 = vpop.f32.mrb[46].mxu1  ;;  %v2062_v63 = vpop.f32.mrb[50].mxu0  ;;  %3350 = vmatprep.mubr.bf16.mxu1 %v2272_v42  ;;  %3391 = vmatprep.mubr.bf16.mxu0 %v2274_v41  ;;  %v4331_v51 = vld [vmem:[%s5639_s18 + $0x118] sm:$0xff]  }
0x10a5   :  { %v2020_v5 = vadd.f32 %v2019_v62, %v1671_v24  ;;  %v2063_v6 = vadd.f32 %v2062_v63, %v1679_v25  ;;  %v2021_v7 = vpop.f32.mrb[47].mxu1  ;;  %v2064_v8 = vpop.f32.mrb[51].mxu0  ;;  %3351 = vmatmul.mubr.bf16.vlgmr.msra.gmra.mrb[56].mxu1 %v2271_v44  ;;  %3392 = vmatmul.mubr.bf16.vlgmr.msra.gmra.mrb[60].mxu0 %v2273_v38  ;;  %v2243_v16 = vmax.f32 %v2016_v48, 0.0  ;;  %v2245_v17 = vmax.f32 %v2059_v50, 0.0  ;;  %v4332_v52 = vld [vmem:[%s5639_s18 + $0x198] sm:$0xff]  }
0x10a6   :  { %v2022_v15 = vadd.f32 %v2021_v7, %v1675_v27  ;;  %v2065_v35 = vadd.f32 %v2064_v8, %v1683_v28  ;;  %3964 = vmatpush3.bf16.msra.mxu1 %v4319_v46  ;;  %3986 = vmatpush3.bf16.msra.mxu0 %v4320_v47  ;;  %v2244_v33 = vmax.f32 %v2018_v60, 0.0  ;;  %v2246_v20 = vmax.f32 %v2061_v61, 0.0  ;;  %v4327_v27 = vld [vmem:[%s5639_s18 + $0x110] sm:$0xff]   ;;  %v4333_v60 = vld [vmem:[%s5639_s18 + $0x160] sm:$0xff]  }
0x10a7   :  { %v2259_v19 = vmax.f32 %v2020_v5, 0.0  ;;  %v2261_v18 = vmax.f32 %v2063_v6, 0.0  ;;  %3965 = vmatprep.subr.bf16.mxu1 %v4321_v53  ;;  %3987 = vmatprep.subr.bf16.mxu0 %v4322_v55  ;;  %v4328_v28 = vld [vmem:[%s5639_s18 + $0x190] sm:$0xff]   ;;  %v1703_v46 = vrot.slane %v5246_v0, %v1670_v9  ;;  %v1707_v47 = vrot.slane %v5246_v0, %v1674_v11  ;;  %v4334_v61 = vld [vmem:[%s5639_s18 + $0x1e0] sm:$0xff]  }
0x10a8   :  { %v2260_v21 = vmax.f32 %v2022_v15, 0.0  ;;  %v2262_v22 = vmax.f32 %v2065_v35, 0.0  ;;  %v1715_v9 = vrot.slane %v5246_v0, %v1682_v12  ;;  %v4336_v15 = vld [vmem:[%s5639_s18 + $0x1a0] sm:$0xff]  }
0x10a9   :  { %v5302_v23 = vpack.c.bf16 %v2259_v19, %v2243_v16  ;;  %v5304_v4 = vpack.c.bf16 %v2261_v18, %v2245_v17  ;;  %v4337_v16 = vld [vmem:[%s5639_s18 + $0x168] sm:$0xff]  }
0x10aa   :  { %v2276_v24 = vpack.c.bf16 %v2260_v21, %v2244_v33  ;;  %v2278_v25 = vpack.c.bf16 %v2262_v22, %v2246_v20  ;;  %3966 = vmatpush3.bf16.msra.mxu1 %v4323_v13  ;;  %3988 = vmatpush3.bf16.msra.mxu0 %v4324_v54  ;;  %v2101_v26 = vpop.f32.mrb[48].mxu1  ;;  %v2144_v1 = vpop.f32.mrb[52].mxu0  ;;  %v4338_v17 = vld [vmem:[%s5639_s18 + $0x1e8] sm:$0xff]  }
0x10ab   :  { %v2102_v36 = vadd.f32 %v2101_v26, %v1687_v56  ;;  %v2145_v31 = vadd.f32 %v2144_v1, %v1695_v3  ;;  %v2103_v59 = vpop.f32.mrb[49].mxu1  ;;  %v2146_v32 = vpop.f32.mrb[53].mxu0  ;;  %3967 = vmatprep.subr.bf16.mxu1 %v4325_v37  ;;  %3989 = vmatprep.subr.bf16.mxu0 %v4326_v49  ;;  %v4339_v26 = vld [vmem:[%s5639_s18 + $0x128] sm:$0xff]  }
0x10ac   :  { %v2104_v34 = vadd.f32 %v2103_v59, %v1691_v10  ;;  %v2147_v40 = vadd.f32 %v2146_v32, %v1699_v14  ;;  %v2105_v44 = vpop.f32.mrb[50].mxu1  ;;  %v2148_v38 = vpop.f32.mrb[54].mxu0  ;;  %3432 = vmatprep.mubr.bf16.mxu1 %v2276_v24  ;;  %3473 = vmatprep.mubr.bf16.mxu0 %v2278_v25  ;;  %v4340_v1 = vld [vmem:[%s5639_s18 + $0x1a8] sm:$0xff]   ;;  %v4342_v59 = vld [vmem:[%s5639_s18 + $0x1f0] sm:$0xff]  }
0x10ad   :  { %v2106_v42 = vadd.f32 %v2105_v44, %v1687_v56  ;;  %v2149_v41 = vadd.f32 %v2148_v38, %v1695_v3  ;;  %v2107_v43 = vpop.f32.mrb[51].mxu1  ;;  %v2150_v45 = vpop.f32.mrb[55].mxu0  ;;  %v2247_v53 = vmax.f32 %v2102_v36, 0.0  ;;  %v2249_v55 = vmax.f32 %v2145_v31, 0.0 }
0x10ae   :  { %v2108_v48 = vadd.f32 %v2107_v43, %v1691_v10  ;;  %v2151_v50 = vadd.f32 %v2150_v45, %v1699_v14  ;;  %3968 = vmatpush3.bf16.msra.mxu1 %v4327_v27  ;;  %3990 = vmatpush3.bf16.msra.mxu0 %v4328_v28  ;;  %v2248_v62 = vmax.f32 %v2104_v34, 0.0  ;;  %v2250_v63 = vmax.f32 %v2147_v40, 0.0  ;;  %v4335_v10 = vld [vmem:[%s5639_s18 + $0x120] sm:$0xff]   ;;  %v4344_v43 = vld [vmem:[%s5639_s18 + $0x1b0] sm:$0xff]   ;;  %v4345_v45 = vld [vmem:[%s5639_s18 + $0x178] sm:$0xff]  }
0x10af   :  { %v2263_v56 = vmax.f32 %v2106_v42, 0.0  ;;  %v2265_v11 = vmax.f32 %v2149_v41, 0.0  ;;  %3969 = vmatprep.subr.bf16.mxu1 %v4329_v58  ;;  %3991 = vmatprep.subr.bf16.mxu0 %v4330_v39  ;;  %v4343_v41 = vld [vmem:[%s5639_s18 + $0x130] sm:$0xff]  }
0x10b0   :  { %v2264_v3 = vmax.f32 %v2108_v48, 0.0  ;;  %v2266_v30 = vmax.f32 %v2151_v50, 0.0  ;;  %v4348_v48 = vld [vmem:[%s5639_s18 + $0x1b8] sm:$0xff]   ;;  %v4349_v50 = vld [vmem:[%s5639_s18 + $0x240] sm:$0xff]  }
0x10b1   :  { %v5339_v5 = vpack.c.bf16 %v2263_v56, %v2247_v53  ;;  %v5341_v0 = vpack.c.bf16 %v2265_v11, %v2249_v55  ;;  %v4353_v53 = vld [vmem:[%s5639_s18 + $0x248] sm:$0xff]  }
0x10b2   :  { %v5343_v12 = vpack.c.bf16 %v2264_v3, %v2248_v62  ;;  %v5345_v6 = vpack.c.bf16 %v2266_v30, %v2250_v63  ;;  %3970 = vmatpush3.bf16.msra.mxu1 %v4331_v51  ;;  %3992 = vmatpush3.bf16.msra.mxu0 %v4332_v52  ;;  %v2187_v7 = vpop.f32.mrb[52].mxu1  ;;  %v2230_v8 = vpop.f32.mrb[56].mxu0  ;;  %v4350_v51 = vld [vmem:[%s5639_s18 + $0x2c0] sm:$0xff]   ;;  %v4354_v55 = vld [vmem:[%s5639_s18 + $0x2c8] sm:$0xff]   ;;  %v4361_v62 = vld [vmem:[%s5639_s18 + $0x258] sm:$0xff]  }
0x10b3   :  { %v2188_v35 = vadd.f32 %v2187_v7, %v1703_v46  ;;  %v2231_v13 = vadd.f32 %v2230_v8, %v5249_v2  ;;  %v2189_v54 = vpop.f32.mrb[53].mxu1  ;;  %v2232_v14 = vpop.f32.mrb[57].mxu0  ;;  %3971 = vmatprep.subr.bf16.mxu1 %v4333_v60  ;;  %3993 = vmatprep.subr.bf16.mxu0 %v4334_v61  ;;  %v4351_v52 = vld [vmem:[%s5639_s18 + $0x200] sm:$0xff]   ;;  %v4355_v56 = vld [vmem:[%s5639_s18 + $0x208] sm:$0xff]   ;;  %v4359_v60 = vld [vmem:[%s5639_s18 + $0x210] sm:$0xff]  }
0x10b4   :  { %v2190_v19 = vadd.f32 %v2189_v54, %v1707_v47  ;;  %v2233_v18 = vadd.f32 %v2232_v14, %v1715_v9  ;;  %v2191_v37 = vpop.f32.mrb[54].mxu1  ;;  %v2234_v49 = vpop.f32.mrb[58].mxu0  ;;  %v4356_v11 = vld [vmem:[%s5639_s18 + $0x288] sm:$0xff]   ;;  %v4360_v61 = vld [vmem:[%s5639_s18 + $0x290] sm:$0xff]   ;;  %v4362_v63 = vld [vmem:[%s5639_s18 + $0x2d8] sm:$0xff]  }
0x10b5   :  { %v2192_v33 = vadd.f32 %v2191_v37, %v1703_v46  ;;  %v2235_v20 = vadd.f32 %v2234_v49, %v5249_v2  ;;  %v2193_v21 = vpop.f32.mrb[55].mxu1  ;;  %v2236_v22 = vpop.f32.mrb[59].mxu0  ;;  %v2251_v27 = vmax.f32 %v2188_v35, 0.0  ;;  %v2253_v28 = vmax.f32 %v2231_v13, 0.0  ;;  %v4341_v2 = vld [vmem:[%s5639_s18 + $0x170] sm:$0xff]   ;;  %v4346_v46 = vld [vmem:[%s5639_s18 + $0x1f8] sm:$0xff]  }
0x10b6   :  { %v2194_v24 = vadd.f32 %v2193_v21, %v1707_v47  ;;  %v2237_v25 = vadd.f32 %v2236_v22, %v1715_v9  ;;  %3972 = vmatpush3.bf16.msra.mxu1 %v4335_v10  ;;  %3994 = vmatpush3.bf16.msra.mxu0 %v4336_v15  ;;  %v2252_v32 = vmax.f32 %v2190_v19, 0.0  ;;  %v2254_v58 = vmax.f32 %v2233_v18, 0.0  ;;  %v4347_v47 = vld [vmem:[%s5639_s18 + $0x138] sm:$0xff]   ;;  %v4352_v9 = vld [vmem:[%s5639_s18 + $0x280] sm:$0xff]   ;;  %v4369_v10 = vld [vmem:[%s5639_s18 + $0x268] sm:$0xff]  }
0x10b7   :  { %v2267_v36 = vmax.f32 %v2192_v33, 0.0  ;;  %v2269_v31 = vmax.f32 %v2235_v20, 0.0  ;;  %3973 = vmatprep.subr.bf16.mxu1 %v4337_v16  ;;  %3995 = vmatprep.subr.bf16.mxu0 %v4338_v17  ;;  %v4363_v3 = vld [vmem:[%s5639_s18 + $0x218] sm:$0xff]   ;;  %v4367_v7 = vld [vmem:[%s5639_s18 + $0x220] sm:$0xff]   ;;  %v4370_v15 = vld [vmem:[%s5639_s18 + $0x2e8] sm:$0xff]  }
0x10b8   :  { %v2268_v39 = vmax.f32 %v2194_v24, 0.0  ;;  %v2270_v34 = vmax.f32 %v2237_v25, 0.0  ;;  %v4364_v30 = vld [vmem:[%s5639_s18 + $0x298] sm:$0xff]   ;;  %v4368_v8 = vld [vmem:[%s5639_s18 + $0x2a0] sm:$0xff]   ;;  %v4371_v35 = vld [vmem:[%s5639_s18 + $0x228] sm:$0xff]  }
0x10b9   :  { %v5373_v40 = vpack.c.bf16 %v2267_v36, %v2251_v27  ;;  %v5375_v44 = vpack.c.bf16 %v2269_v31, %v2253_v28  ;;  %v4372_v13 = vld [vmem:[%s5639_s18 + $0x2a8] sm:$0xff]   ;;  %v4373_v54 = vld [vmem:[%s5639_s18 + $0x270] sm:$0xff]   ;;  %v4377_v19 = vld [vmem:[%s5639_s18 + $0x278] sm:$0xff]  }
0x10ba   :  { %v5377_v38 = vpack.c.bf16 %v2268_v39, %v2252_v32  ;;  %v5379_v42 = vpack.c.bf16 %v2270_v34, %v2254_v58  ;;  %3974 = vmatpush3.bf16.msra.mxu1 %v4339_v26  ;;  %3996 = vmatpush3.bf16.msra.mxu0 %v4340_v1  ;;  %v4374_v14 = vld [vmem:[%s5639_s18 + $0x2f0] sm:$0xff]   ;;  %v4378_v18 = vld [vmem:[%s5639_s18 + $0x2f8] sm:$0xff]   ;;  %v4381_v33 = vld [vmem:[%s5639_s18 + $0x340] sm:$0xff]  }
0x10bb   :  { %3975 = vmatprep.subr.bf16.mxu1 %v4341_v2  ;;  %3997 = vmatprep.subr.bf16.mxu0 %v4342_v59  ;;  %v4375_v16 = vld [vmem:[%s5639_s18 + $0x230] sm:$0xff]   ;;  %v4379_v37 = vld [vmem:[%s5639_s18 + $0x238] sm:$0xff]   ;;  %v4382_v20 = vld [vmem:[%s5639_s18 + $0x3c0] sm:$0xff]  }
0x10bc   :  { %v4376_v17 = vld [vmem:[%s5639_s18 + $0x2b0] sm:$0xff]   ;;  %v4380_v49 = vld [vmem:[%s5639_s18 + $0x2b8] sm:$0xff]   ;;  %v4383_v21 = vld [vmem:[%s5639_s18 + $0x300] sm:$0xff]  }
0x10bd   :  { %v4384_v22 = vld [vmem:[%s5639_s18 + $0x380] sm:$0xff]   ;;  %v4385_v24 = vld [vmem:[%s5639_s18 + $0x348] sm:$0xff]   ;;  %v4391_v27 = vld [vmem:[%s5639_s18 + $0x310] sm:$0xff]  }
0x10be   :  { %3976 = vmatpush3.bf16.msra.mxu1 %v4343_v41  ;;  %3998 = vmatpush3.bf16.msra.mxu0 %v4344_v43  ;;  %v4386_v25 = vld [vmem:[%s5639_s18 + $0x3c8] sm:$0xff]   ;;  %v4392_v28 = vld [vmem:[%s5639_s18 + $0x390] sm:$0xff]   ;;  %v4393_v36 = vld [vmem:[%s5639_s18 + $0x358] sm:$0xff]  }
0x10bf   :  { %3977 = vmatprep.subr.bf16.mxu1 %v4345_v45  ;;  %3999 = vmatprep.subr.bf16.mxu0 %v4346_v46  ;;  %v4387_v26 = vld [vmem:[%s5639_s18 + $0x308] sm:$0xff]   ;;  %v4394_v31 = vld [vmem:[%s5639_s18 + $0x3d8] sm:$0xff]   ;;  %v4397_v32 = vld [vmem:[%s5639_s18 + $0x360] sm:$0xff]  }
0x10c0   :  { %v4388_v1 = vld [vmem:[%s5639_s18 + $0x388] sm:$0xff]   ;;  %v4395_v2 = vld [vmem:[%s5639_s18 + $0x318] sm:$0xff]   ;;  %v4398_v58 = vld [vmem:[%s5639_s18 + $0x3e0] sm:$0xff]  }
0x10c1   :  { %v4396_v59 = vld [vmem:[%s5639_s18 + $0x398] sm:$0xff]   ;;  %v4399_v39 = vld [vmem:[%s5639_s18 + $0x320] sm:$0xff]   ;;  %v4403_v41 = vld [vmem:[%s5639_s18 + $0x328] sm:$0xff]  }
0x10c2   :  { %3978 = vmatpush3.bf16.msra.mxu1 %v4347_v47  ;;  %4000 = vmatpush3.bf16.msra.mxu0 %v4348_v48  ;;  %v4400_v34 = vld [vmem:[%s5639_s18 + $0x3a0] sm:$0xff]   ;;  %v4404_v43 = vld [vmem:[%s5639_s18 + $0x3a8] sm:$0xff]   ;;  %v4405_v45 = vld [vmem:[%s5639_s18 + $0x370] sm:$0xff]  }
0x10c3   :  { %4007 = vmatprep.subr.bf16.mxu1 %v4349_v50  ;;  %4029 = vmatprep.subr.bf16.mxu0 %v4350_v51  ;;  %v4406_v46 = vld [vmem:[%s5639_s18 + $0x3f0] sm:$0xff]   ;;  %v4409_v50 = vld [vmem:[%s5639_s18 + $0x378] sm:$0xff]  }
0x10c4   :  { %v4407_v47 = vld [vmem:[%s5639_s18 + $0x330] sm:$0xff]   ;;  %v4410_v51 = vld [vmem:[%s5639_s18 + $0x3f8] sm:$0xff]  }
0x10c5   :  { %3433 = vmatmul.mubr.bf16.vlgmr.msra.gmra.mrb[60].mxu1 %v5302_v23  ;;  %3474 = vmatmul.mubr.bf16.vlgmr.msra.gmra.mrb[64].mxu0 %v5304_v4  ;;  %v4357_v23 = vld [vmem:[%s5639_s18 + $0x250] sm:$0xff]  }
0x10c6   :  { %4008 = vmatpush3.bf16.msra.mxu1 %v4351_v52  ;;  %3514 = vmatprep.mubr.bf16.mxu1 %v5343_v12  ;;  %v4358_v4 = vld [vmem:[%s5639_s18 + $0x2d0] sm:$0xff]   ;;  %v4365_v12 = vld [vmem:[%s5639_s18 + $0x260] sm:$0xff]   ;;  %v4411_v52 = vld [vmem:[%s5639_s18 + $0x338] sm:$0xff]  }
0x10c7   :  { %4030 = vmatpush3.bf16.msra.mxu0 %v4352_v9  ;;  %3555 = vmatprep.mubr.bf16.mxu0 %v5345_v6  ;;  %v4366_v6 = vld [vmem:[%s5639_s18 + $0x2e0] sm:$0xff]   ;;  %v4408_v48 = vld [vmem:[%s5639_s18 + $0x3b0] sm:$0xff]   ;;  %v4412_v9 = vld [vmem:[%s5639_s18 + $0x3b8] sm:$0xff]  }
0x10c8   :  { %4009 = vmatprep.subr.bf16.mxu1 %v4353_v53  ;;  %4031 = vmatprep.subr.bf16.mxu0 %v4354_v55 }
0x10ca   :  { %4010 = vmatpush3.bf16.msra.mxu1 %v4355_v56  ;;  %v3743_v56 = vld [vmem:[%s5640_s19] ss:$0 sm:$0xff] }
0x10cb   :  { %4032 = vmatpush3.bf16.msra.mxu0 %v4356_v11  ;;  %4011 = vmatprep.subr.bf16.mxu1 %v4357_v23 }
0x10cc   :  { %4033 = vmatprep.subr.bf16.mxu0 %v4358_v4 }
0x10ce   :  { %4012 = vmatpush3.bf16.msra.mxu1 %v4359_v60 }
0x10cf   :  { %4034 = vmatpush3.bf16.msra.mxu0 %v4360_v61  ;;  %4013 = vmatprep.subr.bf16.mxu1 %v4361_v62 }
0x10d0   :  { %4035 = vmatprep.subr.bf16.mxu0 %v4362_v63 }
0x10d2   :  { %4014 = vmatpush3.bf16.msra.mxu1 %v4363_v3 }
0x10d3   :  { %4036 = vmatpush3.bf16.msra.mxu0 %v4364_v30  ;;  %4015 = vmatprep.subr.bf16.mxu1 %v4365_v12 }
0x10d4   :  { %4037 = vmatprep.subr.bf16.mxu0 %v4366_v6 }
0x10d6   :  { %4016 = vmatpush3.bf16.msra.mxu1 %v4367_v7 }
0x10d7   :  { %4038 = vmatpush3.bf16.msra.mxu0 %v4368_v8  ;;  %4017 = vmatprep.subr.bf16.mxu1 %v4369_v10 }
0x10d8   :  { %4039 = vmatprep.subr.bf16.mxu0 %v4370_v15 }
0x10da   :  { %4018 = vmatpush3.bf16.msra.mxu1 %v4371_v35 }
0x10db   :  { %4040 = vmatpush3.bf16.msra.mxu0 %v4372_v13  ;;  %4019 = vmatprep.subr.bf16.mxu1 %v4373_v54 }
0x10dc   :  { %4041 = vmatprep.subr.bf16.mxu0 %v4374_v14 }
0x10de   :  { %4020 = vmatpush3.bf16.msra.mxu1 %v4375_v16 }
0x10df   :  { %4042 = vmatpush3.bf16.msra.mxu0 %v4376_v17  ;;  %4021 = vmatprep.subr.bf16.mxu1 %v4377_v19 }
0x10e0   :  { %4043 = vmatprep.subr.bf16.mxu0 %v4378_v18 }
0x10e2   :  { %4022 = vmatpush3.bf16.msra.mxu1 %v4379_v37 }
0x10e3   :  { %4044 = vmatpush3.bf16.msra.mxu0 %v4380_v49  ;;  %4051 = vmatprep.subr.bf16.mxu1 %v4381_v33 }
0x10e4   :  { %4073 = vmatprep.subr.bf16.mxu0 %v4382_v20 }
0x10e5   :  { %3515 = vmatmul.mubr.bf16.vlgmr.msra.gmra.mrb[64].mxu1 %v5339_v5  ;;  %v4389_v5 = vld [vmem:[%s5639_s18 + $0x350] sm:$0xff]  }
0x10e6   :  { %3556 = vmatmul.mubr.bf16.vlgmr.msra.gmra.mrb[68].mxu0 %v5341_v0  ;;  %4052 = vmatpush3.bf16.msra.mxu1 %v4383_v21  ;;  %v4390_v0 = vld [vmem:[%s5639_s18 + $0x3d0] sm:$0xff]  }
0x10e7   :  { %3596 = vmatprep.mubr.bf16.mxu1 %v5377_v38  ;;  %4074 = vmatpush3.bf16.msra.mxu0 %v4384_v22  ;;  %v4401_v38 = vld [vmem:[%s5639_s18 + $0x368] sm:$0xff]  }
0x10e8   :  { %3637 = vmatprep.mubr.bf16.mxu0 %v5379_v42  ;;  %4053 = vmatprep.subr.bf16.mxu1 %v4385_v24  ;;  %v4402_v42 = vld [vmem:[%s5639_s18 + $0x3e8] sm:$0xff]   ;;  %s4540_s18 = smov [#allocation2]  }
0x10e9   :  { %4075 = vmatprep.subr.bf16.mxu0 %v4386_v25  ;;  %s3655_s19 = sshll.u32 %s4540_s18, 4  ;;  %s3656_s19 = int_to_ptr.vmem [resolvable:$true] %s3655_s19 }
0x10ea   :  { %4054 = vmatpush3.bf16.msra.mxu1 %v4387_v26  ;;  %s4505_s11 = scalar_lea.vmem %s3656_s19, 256  ;;  %p4510_p1 = scmp.lt.s32.totalorder %s3656_s19, %s3656_s19 }
0x10eb   :  { %4076 = vmatpush3.bf16.msra.mxu0 %v4388_v1  ;;  %4055 = vmatprep.subr.bf16.mxu1 %v4389_v5  ;;  %p4506_p0 = scmp.ne.s32.totalorder %s3656_s19, %s4505_s11  ;;  %p4511_p2 = scmp.lt.s32.totalorder %s4505_s11, %s4505_s11 }
0x10ec   :  { %4077 = vmatprep.subr.bf16.mxu0 %v4390_v0 }
0x10ed   :  { %p4512_p3 = por %p4511_p2, %p4510_p1 }
0x10ee   :  { %4056 = vmatpush3.bf16.msra.mxu1 %v4391_v27 }
0x10ef   :  { %4078 = vmatpush3.bf16.msra.mxu0 %v4392_v28  ;;  %4057 = vmatprep.subr.bf16.mxu1 %v4393_v36  ;;  %p4513_p4 = pnand %p4512_p3, %p4506_p0 }
0x10f0   :  { %4079 = vmatprep.subr.bf16.mxu0 %v4394_v31 }
0x10f2   :  { %4058 = vmatpush3.bf16.msra.mxu1 %v4395_v2 }
0x10f3   :  { %4080 = vmatpush3.bf16.msra.mxu0 %v4396_v59  ;;  %4059 = vmatprep.subr.bf16.mxu1 %v4397_v32 }
0x10f4   :  { %4081 = vmatprep.subr.bf16.mxu0 %v4398_v58 }
0x10f6   :  { %4060 = vmatpush3.bf16.msra.mxu1 %v4399_v39 }
0x10f7   :  { %4082 = vmatpush3.bf16.msra.mxu0 %v4400_v34  ;;  %4061 = vmatprep.subr.bf16.mxu1 %v4401_v38 }
0x10f8   :  { %4083 = vmatprep.subr.bf16.mxu0 %v4402_v42 }
0x10fa   :  { %4062 = vmatpush3.bf16.msra.mxu1 %v4403_v41 }
0x10fb   :  { %4084 = vmatpush3.bf16.msra.mxu0 %v4404_v43  ;;  %4063 = vmatprep.subr.bf16.mxu1 %v4405_v45 }
0x10fc   :  { %4085 = vmatprep.subr.bf16.mxu0 %v4406_v46 }
0x10fe   :  { %4064 = vmatpush3.bf16.msra.mxu1 %v4407_v47 }
0x10ff   :  { %4086 = vmatpush3.bf16.msra.mxu0 %v4408_v48  ;;  %4065 = vmatprep.subr.bf16.mxu1 %v4409_v50 }
0x1100   :  { %4087 = vmatprep.subr.bf16.mxu0 %v4410_v51 }
0x1102   :  { %4066 = vmatpush3.bf16.msra.mxu1 %v4411_v52 }
0x1103   :  { %4088 = vmatpush3.bf16.msra.mxu0 %v4412_v9 }
0x1105   :  { %3597 = vmatmul.mubr.bf16.vlgmr.msra.gmra.mrb[68].mxu1 %v5373_v40 }
0x1106   :  { %3638 = vmatmul.mubr.bf16.vlgmr.msra.gmra.mrb[72].mxu0 %v5375_v44 }
0x1178   :  { %v3935_v53 = vpop.f32.mrb[56].mxu1  ;;  %v3957_v55 = vpop.f32.mrb[60].mxu0 }
0x1179   :  { %v3936_v11 = vpop.f32.mrb[57].mxu1  ;;  %v3958_v23 = vpop.f32.mrb[61].mxu0 }
0x117a   :  { %v3937_v4 = vadd.f32 %v3936_v11, %v3935_v53  ;;  %v3959_v60 = vadd.f32 %v3958_v23, %v3957_v55  ;;  %v3938_v61 = vpop.f32.mrb[58].mxu1  ;;  %v3960_v62 = vpop.f32.mrb[62].mxu0 }
0x117b   :  { %v3939_v63 = vpop.f32.mrb[59].mxu1  ;;  %v3961_v3 = vpop.f32.mrb[63].mxu0 }
0x117c   :  { %v3353_v30 = vadd.f32 %v3937_v4, %v3743_v56  ;;  %v3940_v12 = vadd.f32 %v3939_v63, %v3938_v61  ;;  %v3962_v6 = vadd.f32 %v3961_v3, %v3960_v62 }
0x117e   :  { %v3394_v40 = vadd.f32 %v3959_v60, %v3353_v30  ;;  %v3356_v7 = vadd.f32 %v3940_v12, %v3743_v56 }
0x1180   :  { %v3397_v44 = vadd.f32 %v3962_v6, %v3356_v7 }
0x1198   :  { %v3979_v8 = vpop.f32.mrb[60].mxu1  ;;  %v4001_v10 = vpop.f32.mrb[64].mxu0 }
0x1199   :  { %v3980_v15 = vpop.f32.mrb[61].mxu1  ;;  %v4002_v35 = vpop.f32.mrb[65].mxu0 }
0x119a   :  { %v3981_v13 = vadd.f32 %v3980_v15, %v3979_v8  ;;  %v4003_v54 = vadd.f32 %v4002_v35, %v4001_v10  ;;  %v3982_v14 = vpop.f32.mrb[62].mxu1  ;;  %v4004_v16 = vpop.f32.mrb[66].mxu0 }
0x119b   :  { %v3983_v17 = vpop.f32.mrb[63].mxu1  ;;  %v4005_v19 = vpop.f32.mrb[67].mxu0 }
0x119c   :  { %v3435_v18 = vadd.f32 %v3981_v13, %v3394_v40  ;;  %v3984_v37 = vadd.f32 %v3983_v17, %v3982_v14  ;;  %v4006_v49 = vadd.f32 %v4005_v19, %v4004_v16 }
0x119e   :  { %v3476_v33 = vadd.f32 %v4003_v54, %v3435_v18  ;;  %v3438_v20 = vadd.f32 %v3984_v37, %v3397_v44 }
0x11a0   :  { %v3479_v21 = vadd.f32 %v4006_v49, %v3438_v20 }
0x11b8   :  { %v4023_v22 = vpop.f32.mrb[64].mxu1 }
0x11b9   :  { %v4045_v24 = vpop.f32.mrb[68].mxu0  ;;  %v4024_v25 = vpop.f32.mrb[65].mxu1 }
0x11ba   :  { %v4025_v26 = vadd.f32 %v4024_v25, %v4023_v22  ;;  %v4046_v1 = vpop.f32.mrb[69].mxu0  ;;  %v4026_v5 = vpop.f32.mrb[66].mxu1 }
0x11bb   :  { %v4047_v0 = vadd.f32 %v4046_v1, %v4045_v24  ;;  %v4048_v27 = vpop.f32.mrb[70].mxu0  ;;  %v4027_v28 = vpop.f32.mrb[67].mxu1 }
0x11bc   :  { %v3517_v36 = vadd.f32 %v4025_v26, %v3476_v33  ;;  %v4028_v31 = vadd.f32 %v4027_v28, %v4026_v5  ;;  %v4049_v2 = vpop.f32.mrb[71].mxu0 }
0x11bd   :  { %v4050_v59 = vadd.f32 %v4049_v2, %v4048_v27 }
0x11be   :  { %v3558_v32 = vadd.f32 %v4047_v0, %v3517_v36  ;;  %v3520_v58 = vadd.f32 %v4028_v31, %v3479_v21 }
0x11c0   :  { %v3561_v39 = vadd.f32 %v4050_v59, %v3520_v58 }
0x11d8   :  { %v4067_v34 = vpop.f32.mrb[68].mxu1 }
0x11d9   :  { %v4089_v38 = vpop.f32.mrb[72].mxu0  ;;  %v4068_v42 = vpop.f32.mrb[69].mxu1 }
0x11da   :  { %v4069_v41 = vadd.f32 %v4068_v42, %v4067_v34  ;;  %v4090_v43 = vpop.f32.mrb[73].mxu0  ;;  %v4070_v45 = vpop.f32.mrb[70].mxu1 }
0x11db   :  { %v4091_v46 = vadd.f32 %v4090_v43, %v4089_v38  ;;  %v4092_v47 = vpop.f32.mrb[74].mxu0  ;;  %v4071_v48 = vpop.f32.mrb[71].mxu1 }
0x11dc   :  { %v3599_v50 = vadd.f32 %v4069_v41, %v3558_v32  ;;  %v4072_v51 = vadd.f32 %v4071_v48, %v4070_v45  ;;  %v4093_v52 = vpop.f32.mrb[75].mxu0 }
0x11dd   :  { %v4094_v9 = vadd.f32 %v4093_v52, %v4092_v47 }
0x11de   :  { %v3640_v53 = vadd.f32 %v4091_v46, %v3599_v50  ;;  %v3602_v55 = vadd.f32 %v4072_v51, %v3561_v39 }
0x11e0   :  { %v3646_v56 = vadd.f32 %v3640_v53, %v4984_v29  ;;  %v3643_v11 = vadd.f32 %v4094_v9, %v3602_v55 }
0x11e2   :  { %3648 = vst.msk [vmem:[#allocation2] sm:$0xff] %vm73_vm0, %v3646_v56  ;;  %v3647_v23 = vadd.f32 %v3643_v11, %v4987_v57 }
0x11e4   :  { %3649 = vst.msk [vmem:[#allocation2 + $0x8] sm:$0xff] %vm73_vm0, %v3647_v23 }
0x11e5   :  { %4516 = shalt.err (!%p4513_p4)
}
0x11e6   :  { %s4517_s24 = scalar_lea.hbm %s5641_s20, 256 }
0x11e7   :  { %p4518_p5 = scmp.ne.s32.totalorder %s5641_s20, %s4517_s24  ;;  %p4521_p6 = scmp.lt.u32.totalorder %s4517_s24, %s5641_s20 }
0x11e9   :  { %p4523_p7 = pnand %p4521_p6, %p4518_p5 }
0x11eb   :  { %4526 = shalt.err (!%p4523_p7)
}
0x11ec   :  { %s4541_s30 = smov 128  }
0x11ed   :  { %3661 = dma.vmem_to_hbm [thread:$0]  %s3656_s19, 256, %s5641_s20, [#allocation3], %s4541_s30, %s4541_s30, %s4536_s21  }
0x11ee   :  { %4527 = dma.done.wait [#allocation3], 256  }
0x11ef   :  { %4528 = vsyncadd [#allocation3], 4294967040 }
0x11f0   :  { %3665 = vsyncpa [#allocation3], 1 }

</bundles_post_ra>
